<compile_context>
chip_gen: v5e
topology: v5e:2x2
jax: 0.10.0
libtpu: 0.0.40
codegen_flags: <defaults>
</compile_context>

<pallas_src>
import functools

import jax
import jax.numpy as jnp
from jax.experimental import pallas as pl
from jax.experimental.pallas import tpu as pltpu

IN_FEATURES = 28 * 28   # 784 (kept un-padded; full-last-dim blocks are legal)
HIDDEN = 512
OUT_FEATURES = 10
OUT_PAD = 128           # lane-dense output block -> unmasked vst


def _round_up(n, m):
    return ((n + m - 1) // m) * m


def _mlp_kernel(x_ref, w1_ref, b1_ref, w2_ref, b2_ref, w3_ref, b3_ref, o_ref):
    # One (TM, 784) bf16 batch tile per grid step.  Weights/biases have constant
    # index_maps so they stay resident in VMEM across the whole batch grid.
    x = x_ref[...]                                                    # (TM, 784) bf16

    # Layer 1: Linear(784->512) + ReLU   (bf16 MXU inputs, f32 accumulate)
    h1 = jnp.dot(x, w1_ref[...], preferred_element_type=jnp.float32) + b1_ref[...]
    h1 = jnp.maximum(h1, 0.0).astype(jnp.bfloat16)

    # Layer 2: Linear(512->512) + ReLU
    h2 = jnp.dot(h1, w2_ref[...], preferred_element_type=jnp.float32) + b2_ref[...]
    h2 = jnp.maximum(h2, 0.0).astype(jnp.bfloat16)

    # Layer 3: Linear(512->10), zero-padded to 128 output lanes (lane-dense store)
    logits = jnp.dot(h2, w3_ref[...], preferred_element_type=jnp.float32) + b3_ref[...]
    o_ref[...] = logits.astype(o_ref.dtype)                           # bf16 store


def prepare_params(params):
    """Cast weights to bf16; zero-pad only the 10-wide output layer to 128 lanes.

    Input params are the f32, PyTorch-equivalent parameters (weights already
    transposed to (in, out) so the kernel computes x @ W + b):
      w1 (784,512), b1 (1,512), w2 (512,512), b2 (1,512), w3 (512,10), b3 (1,10)
    """
    w1, b1, w2, b2, w3, b3 = params
    w3p = jnp.zeros((HIDDEN, OUT_PAD), jnp.bfloat16).at[:, :OUT_FEATURES].set(
        w3.astype(jnp.bfloat16))
    b3p = jnp.zeros((1, OUT_PAD), jnp.float32).at[:, :OUT_FEATURES].set(
        b3.astype(jnp.float32))
    return (w1.astype(jnp.bfloat16), b1.astype(jnp.float32),
            w2.astype(jnp.bfloat16), b2.astype(jnp.float32),
            w3p, b3p)


@functools.partial(jax.jit, static_argnames=("tm",))
def mlp_forward(x, kernel_params, *, tm=512):
    """x: (B, 28, 28) float32 -> logits (B, 10) float32.

    kernel_params: output of prepare_params().
    tm: max batch-tile rows per grid step.  512 suits v6e/v7x large batches;
        128-256 is plenty on v5e.
    """
    w1, b1, w2, b2, w3p, b3p = kernel_params
    B = x.shape[0]

    # nn.Flatten() + cast the activation stream to bf16 at the kernel boundary.
    x_flat = x.reshape(B, IN_FEATURES).astype(jnp.bfloat16)

    # Tile selection:
    #  * clamp to the (16-aligned) batch for tiny batches -> no dead-row compute
    #  * keep >= 2 grid steps when the batch allows it (feeds both v7x TCs)
    tm_eff = min(tm, _round_up(B, 16))
    if B > 32 and pl.cdiv(B, tm_eff) < 2:
        tm_eff = _round_up(tm_eff // 2, 16)
    b_pad = pl.cdiv(B, tm_eff) * tm_eff
    if b_pad != B:
        x_flat = jnp.pad(x_flat, ((0, b_pad - B), (0, 0)))

    # VMEM-resident weights/biases: constant index_map, full-array block.
    const = lambda a: pl.BlockSpec(a.shape, lambda i: (0, 0))

    out = pl.pallas_call(
        _mlp_kernel,
        out_shape=jax.ShapeDtypeStruct((b_pad, OUT_PAD), jnp.bfloat16),
        grid=(b_pad // tm_eff,),
        in_specs=[
            pl.BlockSpec((tm_eff, IN_FEATURES), lambda i: (i, 0)),  # batch-tiled x
            const(w1), const(b1),
            const(w2), const(b2),
            const(w3p), const(b3p),
        ],
        out_specs=pl.BlockSpec((tm_eff, OUT_PAD), lambda i: (i, 0)),
        compiler_params=pltpu.CompilerParams(
            dimension_semantics=("parallel",),
            vmem_limit_bytes=32 << 20,   # working set << 32 MiB even at tm=512
        ),
    )(x_flat, w1, b1, w2, b2, w3p, b3p)

    return out[:B, :OUT_FEATURES].astype(jnp.float32)


def init_params(key):
    """Deterministic init mimicking PyTorch nn.Linear default (uniform +/- 1/sqrt(fan_in)).
    Weights stored as (in_features, out_features); biases as (1, out_features)."""
    dims = [(IN_FEATURES, HIDDEN), (HIDDEN, HIDDEN), (HIDDEN, OUT_FEATURES)]
    params = []
    for i, (fan_in, fan_out) in enumerate(dims):
        kw, kb = jax.random.split(jax.random.fold_in(key, i))
        bound = 1.0 / jnp.sqrt(fan_in)
        w = jax.random.uniform(kw, (fan_in, fan_out), jnp.float32, -bound, bound)
        b = jax.random.uniform(kb, (1, fan_out), jnp.float32, -bound, bound)
        params.extend([w, b])
    return tuple(params)


def reference_forward(x, params):
    """Pure-JAX f32 reference (PyTorch semantics) for validation."""
    w1, b1, w2, b2, w3, b3 = params
    h = x.reshape(x.shape[0], -1)
    h = jnp.maximum(h @ w1 + b1, 0.0)
    h = jnp.maximum(h @ w2 + b2, 0.0)
    return h @ w3 + b3


if __name__ == "__main__":
    key = jax.random.PRNGKey(0)
    params = init_params(key)                 # f32, PyTorch-equivalent
    kernel_params = prepare_params(params)    # bf16 weights, lane-padded layer 3

    # Small example batch of MNIST-shaped inputs: (B=2, 28, 28)
    x = jax.random.normal(jax.random.fold_in(key, 100), (2, 28, 28), jnp.float32)

    logits = mlp_forward(x, kernel_params)
    logits = jax.block_until_ready(logits)

    ref = reference_forward(x, params)
    assert logits.shape == (2, 10)
    # bf16 activations/weights/outputs on the MXU -> relaxed tolerance vs f32 ref.
    assert jnp.allclose(logits, ref, atol=5e-2, rtol=5e-2), "mismatch vs reference"

    print("KERNEL_OK")
</pallas_src>

<mosaic_0001>
module attributes {stable_mosaic.version = 11 : i64} {
  func.func @_mlp_kernel(%arg0: i32, %arg1: memref<16x784xbf16, #tpu.memory_space<vmem>>, %arg2: memref<784x512xbf16, #tpu.memory_space<vmem>>, %arg3: memref<1x512xf32, #tpu.memory_space<vmem>>, %arg4: memref<512x512xbf16, #tpu.memory_space<vmem>>, %arg5: memref<1x512xf32, #tpu.memory_space<vmem>>, %arg6: memref<512x128xbf16, #tpu.memory_space<vmem>>, %arg7: memref<1x128xf32, #tpu.memory_space<vmem>>, %arg8: memref<16x128xbf16, #tpu.memory_space<vmem>>) attributes {dimension_semantics = [#tpu.dimension_semantics<parallel>], iteration_bounds = array<i64: 1>, scalar_prefetch = 0 : i64, scratch_operands = 0 : i64, tpu.core_type = #tpu.core_type<tc>, window_params = [{transform_indices = @transform_0, window_bounds = array<i64: 16, 784>}, {pipeline_mode = #tpu.pipeline_mode<synchronous>, transform_indices = @transform_1, window_bounds = array<i64: 784, 512>}, {pipeline_mode = #tpu.pipeline_mode<synchronous>, transform_indices = @transform_2, window_bounds = array<i64: 1, 512>}, {pipeline_mode = #tpu.pipeline_mode<synchronous>, transform_indices = @transform_3, window_bounds = array<i64: 512, 512>}, {pipeline_mode = #tpu.pipeline_mode<synchronous>, transform_indices = @transform_4, window_bounds = array<i64: 1, 512>}, {pipeline_mode = #tpu.pipeline_mode<synchronous>, transform_indices = @transform_5, window_bounds = array<i64: 512, 128>}, {pipeline_mode = #tpu.pipeline_mode<synchronous>, transform_indices = @transform_6, window_bounds = array<i64: 1, 128>}, {transform_indices = @transform_7, window_bounds = array<i64: 16, 128>}]} {
    %c0 = arith.constant 0 : index
    %c0_0 = arith.constant 0 : index
    %0 = vector.load %arg1[%c0, %c0_0] : memref<16x784xbf16, #tpu.memory_space<vmem>>, vector<16x784xbf16>
    %c0_1 = arith.constant 0 : index
    %c0_2 = arith.constant 0 : index
    %1 = vector.load %arg2[%c0_1, %c0_2] : memref<784x512xbf16, #tpu.memory_space<vmem>>, vector<784x512xbf16>
    %cst = arith.constant dense<0.000000e+00> : vector<16x512xf32>
    %2 = tpu.matmul %0, %1, %cst {dimension_numbers = #tpu.dot_dimension_numbers<[1], [0], [0], [1], [0, 0, 1, 1], [], []>} : vector<16x784xbf16>, vector<784x512xbf16>, vector<16x512xf32> -> vector<16x512xf32>
    %c0_3 = arith.constant 0 : index
    %c0_4 = arith.constant 0 : index
    %3 = vector.load %arg3[%c0_3, %c0_4] : memref<1x512xf32, #tpu.memory_space<vmem>>, vector<1x512xf32>
    %4 = vector.broadcast %3 : vector<1x512xf32> to vector<16x512xf32>
    %5 = arith.addf %2, %4 : vector<16x512xf32>
    %cst_5 = arith.constant 0.000000e+00 : f32
    %6 = vector.broadcast %cst_5 : f32 to vector<16x512xf32>
    %7 = arith.maximumf %5, %6 : vector<16x512xf32>
    %8 = arith.truncf %7 : vector<16x512xf32> to vector<16x512xbf16>
    %c0_6 = arith.constant 0 : index
    %c0_7 = arith.constant 0 : index
    %9 = vector.load %arg4[%c0_6, %c0_7] : memref<512x512xbf16, #tpu.memory_space<vmem>>, vector<512x512xbf16>
    %cst_8 = arith.constant dense<0.000000e+00> : vector<16x512xf32>
    %10 = tpu.matmul %8, %9, %cst_8 {dimension_numbers = #tpu.dot_dimension_numbers<[1], [0], [0], [1], [0, 0, 1, 1], [], []>} : vector<16x512xbf16>, vector<512x512xbf16>, vector<16x512xf32> -> vector<16x512xf32>
    %c0_9 = arith.constant 0 : index
    %c0_10 = arith.constant 0 : index
    %11 = vector.load %arg5[%c0_9, %c0_10] : memref<1x512xf32, #tpu.memory_space<vmem>>, vector<1x512xf32>
    %12 = vector.broadcast %11 : vector<1x512xf32> to vector<16x512xf32>
    %13 = arith.addf %10, %12 : vector<16x512xf32>
    %cst_11 = arith.constant 0.000000e+00 : f32
    %14 = vector.broadcast %cst_11 : f32 to vector<16x512xf32>
    %15 = arith.maximumf %13, %14 : vector<16x512xf32>
    %16 = arith.truncf %15 : vector<16x512xf32> to vector<16x512xbf16>
    %c0_12 = arith.constant 0 : index
    %c0_13 = arith.constant 0 : index
    %17 = vector.load %arg6[%c0_12, %c0_13] : memref<512x128xbf16, #tpu.memory_space<vmem>>, vector<512x128xbf16>
    %cst_14 = arith.constant dense<0.000000e+00> : vector<16x128xf32>
    %18 = tpu.matmul %16, %17, %cst_14 {dimension_numbers = #tpu.dot_dimension_numbers<[1], [0], [0], [1], [0, 0, 1, 1], [], []>} : vector<16x512xbf16>, vector<512x128xbf16>, vector<16x128xf32> -> vector<16x128xf32>
    %c0_15 = arith.constant 0 : index
    %c0_16 = arith.constant 0 : index
    %19 = vector.load %arg7[%c0_15, %c0_16] : memref<1x128xf32, #tpu.memory_space<vmem>>, vector<1x128xf32>
    %20 = vector.broadcast %19 : vector<1x128xf32> to vector<16x128xf32>
    %21 = arith.addf %18, %20 : vector<16x128xf32>
    %22 = arith.truncf %21 : vector<16x128xf32> to vector<16x128xbf16>
    %c0_17 = arith.constant 0 : index
    %c0_18 = arith.constant 0 : index
    %23 = vector.load %arg8[%c0_17, %c0_18] : memref<16x128xbf16, #tpu.memory_space<vmem>>, vector<16x128xbf16>
    tpu.vector_store %arg8[%c0_17, %c0_18], %22 {strides = array<i32>} : memref<16x128xbf16, #tpu.memory_space<vmem>>, vector<16x128xbf16>,
    return
  }
  func.func @transform_0(%arg0: i32) -> (i32, i32) {
    %c0_i32 = arith.constant 0 : i32
    %c0_i32_0 = arith.constant 0 : i32
    return %arg0, %c0_i32 : i32, i32
  }
  func.func @transform_1(%arg0: i32) -> (i32, i32) {
    %c0_i32 = arith.constant 0 : i32
    %c0_i32_0 = arith.constant 0 : i32
    %c0_i32_1 = arith.constant 0 : i32
    return %c0_i32, %c0_i32_0 : i32, i32
  }
  func.func @transform_2(%arg0: i32) -> (i32, i32) {
    %c0_i32 = arith.constant 0 : i32
    %c0_i32_0 = arith.constant 0 : i32
    %c0_i32_1 = arith.constant 0 : i32
    return %c0_i32, %c0_i32_0 : i32, i32
  }
  func.func @transform_3(%arg0: i32) -> (i32, i32) {
    %c0_i32 = arith.constant 0 : i32
    %c0_i32_0 = arith.constant 0 : i32
    %c0_i32_1 = arith.constant 0 : i32
    return %c0_i32, %c0_i32_0 : i32, i32
  }
  func.func @transform_4(%arg0: i32) -> (i32, i32) {
    %c0_i32 = arith.constant 0 : i32
    %c0_i32_0 = arith.constant 0 : i32
    %c0_i32_1 = arith.constant 0 : i32
    return %c0_i32, %c0_i32_0 : i32, i32
  }
  func.func @transform_5(%arg0: i32) -> (i32, i32) {
    %c0_i32 = arith.constant 0 : i32
    %c0_i32_0 = arith.constant 0 : i32
    %c0_i32_1 = arith.constant 0 : i32
    return %c0_i32, %c0_i32_0 : i32, i32
  }
  func.func @transform_6(%arg0: i32) -> (i32, i32) {
    %c0_i32 = arith.constant 0 : i32
    %c0_i32_0 = arith.constant 0 : i32
    %c0_i32_1 = arith.constant 0 : i32
    return %c0_i32, %c0_i32_0 : i32, i32
  }
  func.func @transform_7(%arg0: i32) -> (i32, i32) {
    %c0_i32 = arith.constant 0 : i32
    %c0_i32_0 = arith.constant 0 : i32
    return %arg0, %c0_i32 : i32, i32
  }
}

</mosaic_0001>

<bundles_post_ra>
// kernel: mlp_forward.1
= control target key start
LH: loop header
LB: loop body
LE: loop exit
PB: predicated region body
PF: predicated region fallthrough
CT: control target
= control target key end

     0   :  { %12 = vsyncpa [#allocation3], 0  ;;  %s5172_s0 = inlined_call_operand.vmem [shape: bf16[16,784], index: 0, kind: input, shape index: {}]   ;;  %s5173_s1 = inlined_call_operand.hbm [shape: bf16[784,512], index: 1, kind: input, shape index: {}]   ;;  %s5174_s2 = inlined_call_operand.vmem [shape: f32[1,512], index: 2, kind: input, shape index: {}]   ;;  %s5175_s3 = inlined_call_operand.hbm [shape: bf16[512,512], index: 3, kind: input, shape index: {}]   ;;  %s5176_s4 = inlined_call_operand.vmem [shape: f32[1,512], index: 4, kind: input, shape index: {}]   ;;  %s5177_s5 = inlined_call_operand.hbm [shape: bf16[512,128], index: 5, kind: input, shape index: {}]   ;;  %s5178_s6 = inlined_call_operand.vmem [shape: f32[1,128], index: 6, kind: input, shape index: {}]   ;;  %s5179_s7 = inlined_call_operand.vmem [shape: bf16[16,128], index: 7, kind: output, shape index: {}]  }
   0x1   :  { %13 = vsyncpa [#allocation5], 0  ;;  %s35_s26 = sshll.u32 %s5175_s3, 4  ;;  %s4959_s27 = smov [#allocation4]   ;;  %s36_s26 = int_to_ptr.hbm [resolvable:$true] %s35_s26 }
   0x2   :  { %s37_s28 = sshll.u32 %s4959_s27, 4  ;;  %s20_s8 = sshll.u32 %s5173_s1, 4  ;;  %s38_s28 = int_to_ptr.vmem [resolvable:$true] %s37_s28  ;;  %s21_s8 = int_to_ptr.hbm [resolvable:$true] %s20_s8 }
   0x3   :  { %s4960_s9 = smov 256   ;;  %s4961_s10 = smov 16  }
   0x4   :  { %43 = dma.hbm_to_vmem [thread:$0]  %s36_s26, 16384, %s38_s28, [#allocation5], %s4960_s9, %s4960_s9, %s4961_s10  }
   0x5   :  { %s4962_s11 = smov [#allocation2]   ;;  %s50_s15 = sshll.u32 %s5177_s5, 4  ;;  %s51_s15 = int_to_ptr.hbm [resolvable:$true] %s50_s15 }
   0x6   :  { %s22_s12 = sshll.u32 %s4962_s11, 4  ;;  %s4963_s3 = smov [#allocation6]   ;;  %s23_s12 = int_to_ptr.vmem [resolvable:$true] %s22_s12 }
   0x7   :  { %28 = dma.hbm_to_vmem [thread:$0]  %s21_s8, 25088, %s23_s12, [#allocation3], %s4960_s9, %s4960_s9, %s4961_s10  }
   0x8   :  { %s52_s16 = sshll.u32 %s4963_s3, 4  ;;  %s4964_s17 = smov 64   ;;  %s53_s16 = int_to_ptr.vmem [resolvable:$true] %s52_s16 }
   0x9   :  { %s4965_s18 = smov 4  }
   0xa   :  { %58 = dma.hbm_to_vmem [thread:$0]  %s51_s15, 4096, %s53_s16, [#allocation5], %s4964_s17, %s4964_s17, %s4965_s18  }
   0xb   :  { %4955 = dma.done.wait [#allocation3], 25088  }
   0xc   :  { %4956 = vsyncadd [#allocation3], 4294942208 }
   0xd   :  { %4957 = dma.done.wait [#allocation5], 20480  }
   0xe   :  { %4958 = vsyncadd [#allocation5], 4294946816  ;;  %v3193_v0 = vld [vmem:[#allocation2 + $0xe0] sm:$0xf]  ;;  %v4544_v1 = vld [vmem:[#allocation2 + $0xec] sm:$0xf0] }
   0xf   :  { %v3321_v2 = vld [vmem:[#allocation2 + $0x1e0] sm:$0xf]  ;;  %v3194_v3 = vor.u32 %v4544_v1, %v3193_v0  ;;  %v4576_v4 = vld [vmem:[#allocation2 + $0x1ec] sm:$0xf0]  ;;  %vm1303_vm0 = vcmask 130048  }
  0x10   :  { %v3449_v5 = vld [vmem:[#allocation2 + $0x2e0] sm:$0xf]  ;;  %v4608_v6 = vld [vmem:[#allocation2 + $0x2ec] sm:$0xf0]  ;;  %v3322_v7 = vor.u32 %v4576_v4, %v3321_v2 }
  0x11   :  { %v3450_v8 = vor.u32 %v4608_v6, %v3449_v5  ;;  %v3577_v9 = vld [vmem:[#allocation2 + $0x3e0] sm:$0xf]  ;;  %v4640_v10 = vld [vmem:[#allocation2 + $0x3ec] sm:$0xf0]  ;;  %1307 = vmatpush.bf16.msra.mxu0 %v3194_v3 }
  0x12   :  { %v3177_v11 = vld [vmem:[#allocation2 + $0xc0] sm:$0xf]  ;;  %v3578_v12 = vor.u32 %v4640_v10, %v3577_v9  ;;  %v4540_v13 = vld [vmem:[#allocation2 + $0xcc] sm:$0xf0]  ;;  %1321 = vmatpush.bf16.msra.mxu1 %v3322_v7 }
  0x13   :  { %v3305_v14 = vld [vmem:[#allocation2 + $0x1c0] sm:$0xf]  ;;  %v4572_v15 = vld [vmem:[#allocation2 + $0x1cc] sm:$0xf0]  ;;  %1335 = vmatpush.bf16.msra.mxu2 %v3450_v8  ;;  %v3178_v16 = vor.u32 %v4540_v13, %v3177_v11 }
  0x14   :  { %v3306_v17 = vor.u32 %v4572_v15, %v3305_v14  ;;  %v3433_v18 = vld [vmem:[#allocation2 + $0x2c0] sm:$0xf]  ;;  %v4604_v19 = vld [vmem:[#allocation2 + $0x2cc] sm:$0xf0]  ;;  %1349 = vmatpush.bf16.msra.mxu3 %v3578_v12 }
  0x15   :  { %v3561_v20 = vld [vmem:[#allocation2 + $0x3c0] sm:$0xf]  ;;  %v3434_v21 = vor.u32 %v4604_v19, %v3433_v18  ;;  %v4636_v22 = vld [vmem:[#allocation2 + $0x3cc] sm:$0xf0]  ;;  %1308 = vmatpush.bf16.msra.mxu0 %v3178_v16 }
  0x16   :  { %v3161_v23 = vld [vmem:[#allocation2 + $0xa0] sm:$0xf]  ;;  %v4536_v24 = vld [vmem:[#allocation2 + $0xac] sm:$0xf0]  ;;  %v3562_v25 = vor.u32 %v4636_v22, %v3561_v20  ;;  %1322 = vmatpush.bf16.msra.mxu1 %v3306_v17 }
  0x17   :  { %v3289_v26 = vld [vmem:[#allocation2 + $0x1a0] sm:$0xf]  ;;  %v4568_v27 = vld [vmem:[#allocation2 + $0x1ac] sm:$0xf0]  ;;  %v3162_v29 = vor.u32 %v4536_v24, %v3161_v23  ;;  %1336 = vmatpush.bf16.msra.mxu2 %v3434_v21 }
  0x18   :  { %v3417_v28 = vld [vmem:[#allocation2 + $0x2a0] sm:$0xf]  ;;  %v4600_v30 = vld [vmem:[#allocation2 + $0x2ac] sm:$0xf0]  ;;  %v3290_v33 = vor.u32 %v4568_v27, %v3289_v26  ;;  %1350 = vmatpush.bf16.msra.mxu3 %v3562_v25 }
  0x19   :  { %v3545_v31 = vld [vmem:[#allocation2 + $0x3a0] sm:$0xf]  ;;  %v4632_v32 = vld [vmem:[#allocation2 + $0x3ac] sm:$0xf0]  ;;  %v3418_v34 = vor.u32 %v4600_v30, %v3417_v28  ;;  %1309 = vmatpush.bf16.msra.mxu0 %v3162_v29 }
  0x1a   :  { %v3145_v35 = vld [vmem:[#allocation2 + $0x80] sm:$0xf]  ;;  %v4532_v36 = vld [vmem:[#allocation2 + $0x8c] sm:$0xf0]  ;;  %v3546_v38 = vor.u32 %v4632_v32, %v3545_v31  ;;  %1323 = vmatpush.bf16.msra.mxu1 %v3290_v33  ;;  %v4542_v32 = vld [vmem:[#allocation2 + $0xe4] sm:$0xf] }
  0x1b   :  { %v3273_v37 = vld [vmem:[#allocation2 + $0x180] sm:$0xf]  ;;  %v4564_v39 = vld [vmem:[#allocation2 + $0x18c] sm:$0xf0]  ;;  %v3146_v44 = vor.u32 %v4532_v36, %v3145_v35  ;;  %1337 = vmatpush.bf16.msra.mxu2 %v3418_v34  ;;  %v3195_v33 = vld [vmem:[#allocation2 + $0xf0] sm:$0xf0] }
  0x1c   :  { %v3401_v40 = vld [vmem:[#allocation2 + $0x280] sm:$0xf]  ;;  %v4596_v41 = vld [vmem:[#allocation2 + $0x28c] sm:$0xf0]  ;;  %v3274_v45 = vor.u32 %v4564_v39, %v3273_v37  ;;  %1351 = vmatpush.bf16.msra.mxu3 %v3546_v38  ;;  %v3061_v34 = vld [vmem:[%s5172_s0 + $0x8] sm:$0xf] }
  0x1d   :  { %v3529_v42 = vld [vmem:[#allocation2 + $0x380] sm:$0xf]  ;;  %v4628_v43 = vld [vmem:[#allocation2 + $0x38c] sm:$0xf0]  ;;  %v3402_v46 = vor.u32 %v4596_v41, %v3401_v40  ;;  %1310 = vmatpush.bf16.msra.mxu0 %v3146_v44  ;;  %v4511_v36 = vld [vmem:[%s5172_s0 + $0x20] sm:$0xf0] }
  0x1e   :  { %v3129_v47 = vld [vmem:[#allocation2 + $0x60] sm:$0xf]  ;;  %v4528_v48 = vld [vmem:[#allocation2 + $0x6c] sm:$0xf0]  ;;  %v3530_v50 = vor.u32 %v4628_v43, %v3529_v42  ;;  %1324 = vmatpush.bf16.msra.mxu1 %v3274_v45  ;;  %v4574_v41 = vld [vmem:[#allocation2 + $0x1e4] sm:$0xf] }
  0x1f   :  { %v3257_v49 = vld [vmem:[#allocation2 + $0x160] sm:$0xf]  ;;  %v4560_v51 = vld [vmem:[#allocation2 + $0x16c] sm:$0xf0]  ;;  %v3130_v56 = vor.u32 %v4528_v48, %v3129_v47  ;;  %1338 = vmatpush.bf16.msra.mxu2 %v3402_v46  ;;  %v4510_v43 = vld [vmem:[%s5172_s0 + $0x18] sm:$0xf0] }
  0x20   :  { %v3385_v52 = vld [vmem:[#allocation2 + $0x260] sm:$0xf]  ;;  %v4592_v53 = vld [vmem:[#allocation2 + $0x26c] sm:$0xf0]  ;;  %v3258_v57 = vor.u32 %v4560_v51, %v3257_v49  ;;  %1352 = vmatpush.bf16.msra.mxu3 %v3530_v50  ;;  %v3323_v46 = vld [vmem:[#allocation2 + $0x1f0] sm:$0xf0]  ;;  %v3198_v50 = vor.u32 %v4542_v32, %v3195_v33 }
  0x21   :  { %v3513_v54 = vld [vmem:[#allocation2 + $0x360] sm:$0xf]  ;;  %v4624_v55 = vld [vmem:[#allocation2 + $0x36c] sm:$0xf0]  ;;  %v3386_v58 = vor.u32 %v4592_v53, %v3385_v52  ;;  %1311 = vmatpush.bf16.msra.mxu0 %v3130_v56  ;;  %v4508_v47 = vld [vmem:[%s5172_s0 + $0xc] sm:$0xf] }
  0x22   :  { %v3113_v59 = vld [vmem:[#allocation2 + $0x40] sm:$0xf]  ;;  %v4524_v60 = vld [vmem:[#allocation2 + $0x4c] sm:$0xf0]  ;;  %v3514_v62 = vor.u32 %v4624_v55, %v3513_v54  ;;  %1325 = vmatpush.bf16.msra.mxu1 %v3258_v57  ;;  %v3063_v48 = vld [vmem:[%s5172_s0 + $0x24] sm:$0xf0]  ;;  %v5033_v54 = vor.u32 %v4511_v36, %v3061_v34 }
  0x23   :  { %v3241_v61 = vld [vmem:[#allocation2 + $0x140] sm:$0xf]  ;;  %v4556_v63 = vld [vmem:[#allocation2 + $0x14c] sm:$0xf0]  ;;  %v3114_v4 = vor.u32 %v4524_v60, %v3113_v59  ;;  %1339 = vmatpush.bf16.msra.mxu2 %v3386_v58  ;;  %v4538_v57 = vld [vmem:[#allocation2 + $0xc4] sm:$0xf]  ;;  %v5037_v60 = vor.u32 %v4508_v47, %v3063_v48 }
  0x24   :  { %v3369_v0 = vld [vmem:[#allocation2 + $0x240] sm:$0xf]  ;;  %v4588_v1 = vld [vmem:[#allocation2 + $0x24c] sm:$0xf0]  ;;  %v3242_v6 = vor.u32 %v4556_v63, %v3241_v61  ;;  %1353 = vmatpush.bf16.msra.mxu3 %v3514_v62  ;;  %v3179_v58 = vld [vmem:[#allocation2 + $0xd0] sm:$0xf0]  ;;  %v3326_v63 = vor.u32 %v4574_v41, %v3323_v46 }
  0x25   :  { %v3497_v2 = vld [vmem:[#allocation2 + $0x340] sm:$0xf]  ;;  %v4620_v3 = vld [vmem:[#allocation2 + $0x34c] sm:$0xf0]  ;;  %v3370_v7 = vor.u32 %v4588_v1, %v3369_v0  ;;  %1312 = vmatpush.bf16.msra.mxu0 %v3114_v4  ;;  %v4507_v61 = vld [vmem:[%s5172_s0 + $0x4] sm:$0xf]  ;;  %v3182_v4 = vor.u32 %v4538_v57, %v3179_v58 }
  0x26   :  { %v3097_v5 = vld [vmem:[#allocation2 + $0x20] sm:$0xf]  ;;  %v4520_v8 = vld [vmem:[#allocation2 + $0x2c] sm:$0xf0]  ;;  %v3498_v11 = vor.u32 %v4620_v3, %v3497_v2  ;;  %1326 = vmatpush.bf16.msra.mxu1 %v3242_v6  ;;  %v4570_v1 = vld [vmem:[#allocation2 + $0x1c4] sm:$0xf] }
  0x27   :  { %v3225_v9 = vld [vmem:[#allocation2 + $0x120] sm:$0xf]  ;;  %v4552_v10 = vld [vmem:[#allocation2 + $0x12c] sm:$0xf0]  ;;  %v3098_v18 = vor.u32 %v4520_v8, %v3097_v5  ;;  %1340 = vmatpush.bf16.msra.mxu2 %v3370_v7  ;;  %v3307_v2 = vld [vmem:[#allocation2 + $0x1d0] sm:$0xf0] }
  0x28   :  { %v3353_v12 = vld [vmem:[#allocation2 + $0x220] sm:$0xf]  ;;  %v4584_v13 = vld [vmem:[#allocation2 + $0x22c] sm:$0xf0]  ;;  %v3226_v23 = vor.u32 %v4552_v10, %v3225_v9  ;;  %1354 = vmatpush.bf16.msra.mxu3 %v3498_v11  ;;  %v4534_v10 = vld [vmem:[#allocation2 + $0xa4] sm:$0xf] }
  0x29   :  { %v3481_v14 = vld [vmem:[#allocation2 + $0x320] sm:$0xf]  ;;  %v4616_v15 = vld [vmem:[#allocation2 + $0x32c] sm:$0xf0]  ;;  %v3354_v24 = vor.u32 %v4584_v13, %v3353_v12  ;;  %1313 = vmatpush.bf16.msra.mxu0 %v3098_v18  ;;  %v3163_v11 = vld [vmem:[#allocation2 + $0xb0] sm:$0xf0]  ;;  %v3310_v12 = vor.u32 %v4570_v1, %v3307_v2 }
  0x2a   :  { %v3081_v16 = vld [vmem:[#allocation2] sm:$0xf]  ;;  %v4516_v17 = vld [vmem:[#allocation2 + $0xc] sm:$0xf0]  ;;  %v3482_v28 = vor.u32 %v4616_v15, %v3481_v14  ;;  %1327 = vmatpush.bf16.msra.mxu1 %v3226_v23  ;;  %v4566_v14 = vld [vmem:[#allocation2 + $0x1a4] sm:$0xf] }
  0x2b   :  { %v3209_v19 = vld [vmem:[#allocation2 + $0x100] sm:$0xf]  ;;  %v4548_v20 = vld [vmem:[#allocation2 + $0x10c] sm:$0xf0]  ;;  %v3082_v35 = vor.u32 %v4516_v17, %v3081_v16  ;;  %1341 = vmatpush.bf16.msra.mxu2 %v3354_v24  ;;  %v3291_v15 = vld [vmem:[#allocation2 + $0x1b0] sm:$0xf0]  ;;  %v3166_v17 = vor.u32 %v4534_v10, %v3163_v11 }
  0x2c   :  { %v3337_v21 = vld [vmem:[#allocation2 + $0x200] sm:$0xf]  ;;  %v4580_v22 = vld [vmem:[#allocation2 + $0x20c] sm:$0xf0]  ;;  %v3210_v39 = vor.u32 %v4548_v20, %v3209_v19  ;;  %1355 = vmatpush.bf16.msra.mxu3 %v3482_v28  ;;  %v3147_v23 = vld [vmem:[#allocation2 + $0x90] sm:$0xf0]  ;;  %v3294_v24 = vor.u32 %v4566_v14, %v3291_v15 }
  0x2d   :  { %v3465_v25 = vld [vmem:[#allocation2 + $0x300] sm:$0xf]  ;;  %v4612_v26 = vld [vmem:[#allocation2 + $0x30c] sm:$0xf0]  ;;  %v3338_v40 = vor.u32 %v4580_v22, %v3337_v21  ;;  %1314 = vmatpush.bf16.msra.mxu0 %v3082_v35  ;;  %v4530_v22 = vld [vmem:[#allocation2 + $0x84] sm:$0xf] }
  0x2e   :  { %v3705_v27 = vld [vmem:[#allocation2 + $0x4e0] sm:$0xf]  ;;  %v4672_v29 = vld [vmem:[#allocation2 + $0x4ec] sm:$0xf0]  ;;  %v3466_v44 = vor.u32 %v4612_v26, %v3465_v25  ;;  %1328 = vmatpush.bf16.msra.mxu1 %v3210_v39  ;;  %v4562_v26 = vld [vmem:[#allocation2 + $0x184] sm:$0xf] }
  0x2f   :  { %v3833_v30 = vld [vmem:[#allocation2 + $0x5e0] sm:$0xf]  ;;  %v4704_v31 = vld [vmem:[#allocation2 + $0x5ec] sm:$0xf0]  ;;  %v3706_v45 = vor.u32 %v4672_v29, %v3705_v27  ;;  %1342 = vmatpush.bf16.msra.mxu2 %v3338_v40  ;;  %v3275_v27 = vld [vmem:[#allocation2 + $0x190] sm:$0xf0]  ;;  %v3150_v29 = vor.u32 %v4530_v22, %v3147_v23 }
  0x30   :  { %v3849_v37 = vld [vmem:[#allocation2 + $0x600] sm:$0xf]  ;;  %v4708_v38 = vld [vmem:[#allocation2 + $0x60c] sm:$0xf0]  ;;  %v3834_v49 = vor.u32 %v4704_v31, %v3833_v30  ;;  %1356 = vmatpush.bf16.msra.mxu3 %v3466_v44  ;;  %v4526_v34 = vld [vmem:[#allocation2 + $0x64] sm:$0xf] }
  0x31   :  { %v3053_v42 = vld [vmem:[%s5172_s0] sm:$0xf]  ;;  %v4668_v52 = vld [vmem:[#allocation2 + $0x4cc] sm:$0xf0]  ;;  %v3850_v59 = vor.u32 %v4708_v38, %v3849_v37  ;;  %1363 = vmatpush.bf16.msrb.mxu0 %v3706_v45  ;;  %v3131_v35 = vld [vmem:[#allocation2 + $0x70] sm:$0xf0]  ;;  %v3278_v38 = vor.u32 %v4562_v26, %v3275_v27 }
  0x32   :  { %v3689_v51 = vld [vmem:[#allocation2 + $0x4c0] sm:$0xf]  ;;  %v5035_v55 = vor.u32 %v4510_v43, %v3053_v42  ;;  %v4700_v56 = vld [vmem:[#allocation2 + $0x5cc] sm:$0xf0]  ;;  %1377 = vmatpush.bf16.msrb.mxu1 %v3834_v49  ;;  %1343 = vmatmul.bf16.vlgmr.msra.gmra.mxu2 %v5033_v54  ;;  %v3077_v36 = vld [vmem:[%s5172_s0 + $0x18] sm:$0xf]  ;;  %v3134_v43 = vor.u32 %v4526_v34, %v3131_v35 }
  0x33   :  { %v3817_v53 = vld [vmem:[#allocation2 + $0x5c0] sm:$0xf]  ;;  %v3690_v0 = vor.u32 %v4668_v52, %v3689_v51  ;;  %v4664_v6 = vld [vmem:[#allocation2 + $0x4ac] sm:$0xf0]  ;;  %1398 = vmatpush.bf16.msrb.mxu2 %v3850_v59  ;;  %1357 = vmatmul.bf16.vlgmr.msra.gmra.mxu3 %v5037_v60  ;;  %v4513_v37 = vld [vmem:[%s5172_s0 + $0x30] sm:$0xf0] }
  0x34   :  { %v3055_v62 = vld [vmem:[%s5172_s0 + $0x1c] sm:$0xf0]  ;;  %1405 = vmatpush.bf16.msrb.mxu3 %v3198_v50  ;;  %v3818_v3 = vor.u32 %v4700_v56, %v3817_v53  ;;  %1315 = vmatmul.bf16.vlgmr.msra.gmra.mxu0 %v5035_v55  ;;  %v4696_v9 = vld [vmem:[#allocation2 + $0x5ac] sm:$0xf0]  ;;  %v4558_v40 = vld [vmem:[#allocation2 + $0x164] sm:$0xf]  ;;  %v5057_v50 = vor.u32 %v4513_v37, %v3077_v36 }
  0x35   :  { %v3673_v5 = vld [vmem:[#allocation2 + $0x4a0] sm:$0xf]  ;;  %v5047_v8 = vor.u32 %v4507_v61, %v3055_v62  ;;  %1364 = vmatpush.bf16.msrb.mxu0 %v3690_v0  ;;  %v4660_v19 = vld [vmem:[#allocation2 + $0x48c] sm:$0xf0]  ;;  %v3259_v41 = vld [vmem:[#allocation2 + $0x170] sm:$0xf0] }
  0x36   :  { %v3801_v7 = vld [vmem:[#allocation2 + $0x5a0] sm:$0xf]  ;;  %v3674_v13 = vor.u32 %v4664_v6, %v3673_v5  ;;  %1378 = vmatpush.bf16.msrb.mxu1 %v3818_v3  ;;  %v4692_v21 = vld [vmem:[#allocation2 + $0x58c] sm:$0xf0]  ;;  %v4522_v48 = vld [vmem:[#allocation2 + $0x44] sm:$0xf]  ;;  %v3262_v51 = vor.u32 %v4558_v40, %v3259_v41 }
  0x37   :  { %1419 = vmatpush.bf16.msra.mxu2 %v3326_v63  ;;  %v3802_v16 = vor.u32 %v4696_v9, %v3801_v7  ;;  %v3657_v18 = vld [vmem:[#allocation2 + $0x480] sm:$0xf]  ;;  %1329 = vmatmul.bf16.vlgmr.msra.gmra.mxu1 %v5047_v8  ;;  %v4656_v31 = vld [vmem:[#allocation2 + $0x46c] sm:$0xf0]  ;;  %v3115_v49 = vld [vmem:[#allocation2 + $0x50] sm:$0xf0] }
  0x38   :  { %1406 = vmatpush.bf16.msrb.mxu3 %v3182_v4  ;;  %v3785_v20 = vld [vmem:[#allocation2 + $0x580] sm:$0xf]  ;;  %v3658_v25 = vor.u32 %v4660_v19, %v3657_v18  ;;  %v4688_v33 = vld [vmem:[#allocation2 + $0x56c] sm:$0xf0]  ;;  %v4554_v53 = vld [vmem:[#allocation2 + $0x144] sm:$0xf]  ;;  %v3118_v58 = vor.u32 %v4522_v48, %v3115_v49 }
  0x39   :  { %1365 = vmatpush.bf16.msrb.mxu0 %v3674_v13  ;;  %v3786_v28 = vor.u32 %v4692_v21, %v3785_v20  ;;  %v3641_v30 = vld [vmem:[#allocation2 + $0x460] sm:$0xf]  ;;  %v4652_v45 = vld [vmem:[#allocation2 + $0x44c] sm:$0xf0]  ;;  %v3243_v56 = vld [vmem:[#allocation2 + $0x150] sm:$0xf0] }
  0x3a   :  { %1379 = vmatpush.bf16.msrb.mxu1 %v3802_v16  ;;  %v3769_v32 = vld [vmem:[#allocation2 + $0x560] sm:$0xf]  ;;  %v3642_v39 = vor.u32 %v4656_v31, %v3641_v30  ;;  %v4684_v47 = vld [vmem:[#allocation2 + $0x54c] sm:$0xf0]  ;;  %v4518_v0 = vld [vmem:[#allocation2 + $0x24] sm:$0xf]  ;;  %v3246_v4 = vor.u32 %v4554_v53, %v3243_v56 }
  0x3b   :  { %1420 = vmatpush.bf16.msra.mxu2 %v3310_v12  ;;  %v3770_v42 = vor.u32 %v4688_v33, %v3769_v32  ;;  %v3625_v44 = vld [vmem:[#allocation2 + $0x440] sm:$0xf]  ;;  %v4648_v61 = vld [vmem:[#allocation2 + $0x42c] sm:$0xf0]  ;;  %v3099_v1 = vld [vmem:[#allocation2 + $0x30] sm:$0xf0] }
  0x3c   :  { %1407 = vmatpush.bf16.msrb.mxu3 %v3166_v17  ;;  %v3753_v46 = vld [vmem:[#allocation2 + $0x540] sm:$0xf]  ;;  %v3626_v52 = vor.u32 %v4652_v45, %v3625_v44  ;;  %v4680_v63 = vld [vmem:[#allocation2 + $0x52c] sm:$0xf0]  ;;  %v4550_v2 = vld [vmem:[#allocation2 + $0x124] sm:$0xf]  ;;  %v3102_v11 = vor.u32 %v4518_v0, %v3099_v1 }
  0x3d   :  { %1366 = vmatpush.bf16.msrb.mxu0 %v3658_v25  ;;  %v3754_v57 = vor.u32 %v4684_v47, %v3753_v46  ;;  %v3609_v59 = vld [vmem:[#allocation2 + $0x420] sm:$0xf]  ;;  %v3227_v3 = vld [vmem:[#allocation2 + $0x130] sm:$0xf0]  ;;  %v4644_v7 = vld [vmem:[#allocation2 + $0x40c] sm:$0xf0] }
  0x3e   :  { %1380 = vmatpush.bf16.msrb.mxu1 %v3786_v28  ;;  %v3737_v62 = vld [vmem:[#allocation2 + $0x520] sm:$0xf]  ;;  %v3610_v5 = vor.u32 %v4648_v61, %v3609_v59  ;;  %v4676_v12 = vld [vmem:[#allocation2 + $0x50c] sm:$0xf0]  ;;  %v4514_v13 = vld [vmem:[#allocation2 + $0x4] sm:$0xf]  ;;  %v3230_v21 = vor.u32 %v4550_v2, %v3227_v3 }
  0x3f   :  { %1421 = vmatpush.bf16.msra.mxu2 %v3294_v24  ;;  %v3593_v6 = vld [vmem:[#allocation2 + $0x400] sm:$0xf]  ;;  %v3738_v10 = vor.u32 %v4680_v63, %v3737_v62  ;;  %v3083_v14 = vld [vmem:[#allocation2 + $0x10] sm:$0xf0]  ;;  %v4606_v15 = vld [vmem:[#allocation2 + $0x2e4] sm:$0xf] }
  0x40   :  { %1408 = vmatpush.bf16.msrb.mxu3 %v3150_v29  ;;  %v3721_v9 = vld [vmem:[#allocation2 + $0x500] sm:$0xf]  ;;  %v3451_v16 = vld [vmem:[#allocation2 + $0x2f0] sm:$0xf0]  ;;  %v4638_v17 = vld [vmem:[#allocation2 + $0x3e4] sm:$0xf]  ;;  %v3594_v22 = vor.u32 %v4644_v7, %v3593_v6  ;;  %v3086_v27 = vor.u32 %v4514_v13, %v3083_v14 }
  0x41   :  { %1367 = vmatpush.bf16.msrb.mxu0 %v3642_v39  ;;  %v3579_v18 = vld [vmem:[#allocation2 + $0x3f0] sm:$0xf0]  ;;  %v4670_v19 = vld [vmem:[#allocation2 + $0x4e4] sm:$0xf]  ;;  %v3069_v23 = vld [vmem:[%s5172_s0 + $0x10] sm:$0xf]  ;;  %v3722_v26 = vor.u32 %v4676_v12, %v3721_v9  ;;  %v3454_v31 = vor.u32 %v4606_v15, %v3451_v16 }
  0x42   :  { %1381 = vmatpush.bf16.msrb.mxu1 %v3770_v42  ;;  %3863 = vmatmul.msk.bf16.vlgmr.msrb.gmra.mxu2 %vm1303_vm0, %v5057_v50  ;;  %v3707_v20 = vld [vmem:[#allocation2 + $0x4f0] sm:$0xf0]  ;;  %v4512_v24 = vld [vmem:[%s5172_s0 + $0x28] sm:$0xf0]  ;;  %v4546_v25 = vld [vmem:[#allocation2 + $0x104] sm:$0xf]  ;;  %v3582_v32 = vor.u32 %v4638_v17, %v3579_v18 }
  0x43   :  { %1422 = vmatpush.bf16.msra.mxu2 %v3278_v38  ;;  %v3211_v28 = vld [vmem:[#allocation2 + $0x110] sm:$0xf0]  ;;  %v3071_v30 = vld [vmem:[%s5172_s0 + $0x2c] sm:$0xf0]  ;;  %v4702_v33 = vld [vmem:[#allocation2 + $0x5e4] sm:$0xf]  ;;  %v3710_v36 = vor.u32 %v4670_v19, %v3707_v20  ;;  %v5073_v37 = vor.u32 %v4512_v24, %v3069_v23 }
  0x44   :  { %1409 = vmatpush.bf16.msrb.mxu3 %v3134_v43  ;;  %v4509_v29 = vld [vmem:[%s5172_s0 + $0x14] sm:$0xf]  ;;  %v4602_v35 = vld [vmem:[#allocation2 + $0x2c4] sm:$0xf]  ;;  %v3214_v41 = vor.u32 %v4546_v25, %v3211_v28 }
  0x45   :  { %1368 = vmatpush.bf16.msrb.mxu0 %v3626_v52  ;;  %v3835_v34 = vld [vmem:[#allocation2 + $0x5f0] sm:$0xf0]  ;;  %v4634_v39 = vld [vmem:[#allocation2 + $0x3c4] sm:$0xf]  ;;  %v5075_v42 = vor.u32 %v4509_v29, %v3071_v30 }
  0x46   :  { %1382 = vmatpush.bf16.msrb.mxu1 %v3754_v57  ;;  %v3435_v38 = vld [vmem:[#allocation2 + $0x2d0] sm:$0xf0]  ;;  %v4666_v43 = vld [vmem:[#allocation2 + $0x4c4] sm:$0xf]  ;;  %v3838_v45 = vor.u32 %v4702_v33, %v3835_v34 }
  0x47   :  { %1423 = vmatpush.bf16.msra.mxu2 %v3262_v51  ;;  %v3563_v40 = vld [vmem:[#allocation2 + $0x3d0] sm:$0xf0]  ;;  %v3438_v46 = vor.u32 %v4602_v35, %v3435_v38  ;;  %v4698_v48 = vld [vmem:[#allocation2 + $0x5c4] sm:$0xf] }
  0x48   :  { %1410 = vmatpush.bf16.msrb.mxu3 %v3118_v58  ;;  %v3691_v44 = vld [vmem:[#allocation2 + $0x4d0] sm:$0xf0]  ;;  %v3566_v47 = vor.u32 %v4634_v39, %v3563_v40  ;;  %v4598_v51 = vld [vmem:[#allocation2 + $0x2a4] sm:$0xf] }
  0x49   :  { %1369 = vmatpush.bf16.msrb.mxu0 %v3610_v5  ;;  %v3819_v49 = vld [vmem:[#allocation2 + $0x5d0] sm:$0xf0]  ;;  %v3694_v52 = vor.u32 %v4666_v43, %v3691_v44  ;;  %v4630_v56 = vld [vmem:[#allocation2 + $0x3a4] sm:$0xf] }
  0x4a   :  { %1383 = vmatpush.bf16.msrb.mxu1 %v3738_v10  ;;  %v3419_v53 = vld [vmem:[#allocation2 + $0x2b0] sm:$0xf0]  ;;  %v4662_v58 = vld [vmem:[#allocation2 + $0x4a4] sm:$0xf]  ;;  %v3822_v61 = vor.u32 %v4698_v48, %v3819_v49 }
  0x4b   :  { %1424 = vmatpush.bf16.msra.mxu2 %v3246_v4  ;;  %v3547_v57 = vld [vmem:[#allocation2 + $0x3b0] sm:$0xf0]  ;;  %v3422_v62 = vor.u32 %v4598_v51, %v3419_v53  ;;  %v4694_v0 = vld [vmem:[#allocation2 + $0x5a4] sm:$0xf] }
  0x4c   :  { %1411 = vmatpush.bf16.msrb.mxu3 %v3102_v11  ;;  %v3675_v59 = vld [vmem:[#allocation2 + $0x4b0] sm:$0xf0]  ;;  %v3550_v63 = vor.u32 %v4630_v56, %v3547_v57  ;;  %v4594_v2 = vld [vmem:[#allocation2 + $0x284] sm:$0xf] }
  0x4d   :  { %1370 = vmatpush.bf16.msrb.mxu0 %v3594_v22  ;;  %v3803_v1 = vld [vmem:[#allocation2 + $0x5b0] sm:$0xf0]  ;;  %v3678_v3 = vor.u32 %v4662_v58, %v3675_v59  ;;  %v4626_v5 = vld [vmem:[#allocation2 + $0x384] sm:$0xf] }
  0x4e   :  { %1384 = vmatpush.bf16.msrb.mxu1 %v3722_v26  ;;  %v3403_v4 = vld [vmem:[#allocation2 + $0x290] sm:$0xf0]  ;;  %v4658_v7 = vld [vmem:[#allocation2 + $0x484] sm:$0xf]  ;;  %v3806_v10 = vor.u32 %v4694_v0, %v3803_v1  ;;  %v3201_v0 = vld [vmem:[#allocation2 + $0xe8] sm:$0xf] }
  0x4f   :  { %1425 = vmatpush.bf16.msra.mxu2 %v3230_v21  ;;  %v3531_v6 = vld [vmem:[#allocation2 + $0x390] sm:$0xf0]  ;;  %v3406_v11 = vor.u32 %v4594_v2, %v3403_v4  ;;  %v4690_v13 = vld [vmem:[#allocation2 + $0x584] sm:$0xf]  ;;  %v4545_v1 = vld [vmem:[#allocation2 + $0xf4] sm:$0xf0] }
  0x50   :  { %1412 = vmatpush.bf16.msrb.mxu3 %v3086_v27  ;;  %1371 = vmatmul.bf16.vlgmr.msrb.gmra.mxu0 %v5073_v37  ;;  %v3659_v9 = vld [vmem:[#allocation2 + $0x490] sm:$0xf0]  ;;  %v3534_v12 = vor.u32 %v4626_v5, %v3531_v6  ;;  %v4590_v15 = vld [vmem:[#allocation2 + $0x264] sm:$0xf]  ;;  %v3457_v5 = vld [vmem:[#allocation2 + $0x2e8] sm:$0xf] }
  0x51   :  { %1433 = vmatpush.bf16.msra.mxu0 %v3454_v31  ;;  %1385 = vmatmul.bf16.vlgmr.msrb.gmra.mxu1 %v5075_v42  ;;  %v3787_v14 = vld [vmem:[#allocation2 + $0x590] sm:$0xf0]  ;;  %v3662_v16 = vor.u32 %v4658_v7, %v3659_v9  ;;  %v4622_v18 = vld [vmem:[#allocation2 + $0x364] sm:$0xf]  ;;  %v4609_v6 = vld [vmem:[#allocation2 + $0x2f4] sm:$0xf0] }
  0x52   :  { %1447 = vmatpush.bf16.msra.mxu1 %v3582_v32  ;;  %v3387_v17 = vld [vmem:[#allocation2 + $0x270] sm:$0xf0]  ;;  %v4654_v20 = vld [vmem:[#allocation2 + $0x464] sm:$0xf]  ;;  %v3790_v22 = vor.u32 %v4690_v13, %v3787_v14  ;;  %v3202_v13 = vor.u32 %v4545_v1, %v3201_v0  ;;  %v3585_v14 = vld [vmem:[#allocation2 + $0x3e8] sm:$0xf] }
  0x53   :  { %1426 = vmatpush.bf16.msra.mxu2 %v3214_v41  ;;  %1413 = vmatmul.bf16.vlgmr.msrb.gmra.mxu3 %v5035_v55  ;;  %v3515_v19 = vld [vmem:[#allocation2 + $0x370] sm:$0xf0]  ;;  %v3390_v23 = vor.u32 %v4590_v15, %v3387_v17  ;;  %v4686_v25 = vld [vmem:[#allocation2 + $0x564] sm:$0xf]  ;;  %v4641_v15 = vld [vmem:[#allocation2 + $0x3f4] sm:$0xf0] }
  0x54   :  { %1461 = vmatpush.bf16.msra.mxu3 %v3710_v36  ;;  %v3643_v21 = vld [vmem:[#allocation2 + $0x470] sm:$0xf0]  ;;  %v3518_v24 = vor.u32 %v4622_v18, %v3515_v19  ;;  %v4586_v27 = vld [vmem:[#allocation2 + $0x244] sm:$0xf]  ;;  %v3329_v17 = vld [vmem:[#allocation2 + $0x1e8] sm:$0xf]  ;;  %v3458_v19 = vor.u32 %v4609_v6, %v3457_v5 }
  0x55   :  { %1434 = vmatpush.bf16.msra.mxu0 %v3438_v46  ;;  %v3771_v26 = vld [vmem:[#allocation2 + $0x570] sm:$0xf0]  ;;  %v3646_v28 = vor.u32 %v4654_v20, %v3643_v21  ;;  %v4618_v30 = vld [vmem:[#allocation2 + $0x344] sm:$0xf]  ;;  %v4577_v18 = vld [vmem:[#allocation2 + $0x1f4] sm:$0xf0] }
  0x56   :  { %1448 = vmatpush.bf16.msra.mxu1 %v3566_v47  ;;  %1427 = vmatmul.bf16.vlgmr.msra.gmra.mxu2 %v5047_v8  ;;  %v3371_v29 = vld [vmem:[#allocation2 + $0x250] sm:$0xf0]  ;;  %v4650_v32 = vld [vmem:[#allocation2 + $0x444] sm:$0xf]  ;;  %v3774_v34 = vor.u32 %v4686_v25, %v3771_v26  ;;  %v3185_v21 = vld [vmem:[#allocation2 + $0xc8] sm:$0xf]  ;;  %v3330_v26 = vor.u32 %v4577_v18, %v3329_v17 }
  0x57   :  { %1475 = vmatpush.bf16.msrb.mxu2 %v3838_v45  ;;  %v3499_v31 = vld [vmem:[#allocation2 + $0x350] sm:$0xf0]  ;;  %v3374_v35 = vor.u32 %v4586_v27, %v3371_v29  ;;  %v4682_v38 = vld [vmem:[#allocation2 + $0x544] sm:$0xf]  ;;  %v4605_v25 = vld [vmem:[#allocation2 + $0x2d4] sm:$0xf0] }
  0x58   :  { %1462 = vmatpush.bf16.msra.mxu3 %v3694_v52  ;;  %v3627_v33 = vld [vmem:[#allocation2 + $0x450] sm:$0xf0]  ;;  %v3502_v36 = vor.u32 %v4618_v30, %v3499_v31  ;;  %v4582_v40 = vld [vmem:[#allocation2 + $0x224] sm:$0xf]  ;;  %v3569_v27 = vld [vmem:[#allocation2 + $0x3c8] sm:$0xf] }
  0x59   :  { %1435 = vmatpush.bf16.msra.mxu0 %v3422_v62  ;;  %v3755_v39 = vld [vmem:[#allocation2 + $0x550] sm:$0xf0]  ;;  %v3630_v41 = vor.u32 %v4650_v32, %v3627_v33  ;;  %v4614_v44 = vld [vmem:[#allocation2 + $0x324] sm:$0xf]  ;;  %v3313_v30 = vld [vmem:[#allocation2 + $0x1c8] sm:$0xf] }
  0x5a   :  { %1449 = vmatpush.bf16.msra.mxu1 %v3550_v63  ;;  %v3355_v43 = vld [vmem:[#allocation2 + $0x230] sm:$0xf0]  ;;  %v4646_v46 = vld [vmem:[#allocation2 + $0x424] sm:$0xf]  ;;  %v3758_v48 = vor.u32 %v4682_v38, %v3755_v39  ;;  %v4573_v31 = vld [vmem:[#allocation2 + $0x1d4] sm:$0xf0] }
  0x5b   :  { %1476 = vmatpush.bf16.msrb.mxu2 %v3822_v61  ;;  %v3483_v45 = vld [vmem:[#allocation2 + $0x330] sm:$0xf0]  ;;  %v4678_v49 = vld [vmem:[#allocation2 + $0x524] sm:$0xf]  ;;  %v3358_v52 = vor.u32 %v4582_v40, %v3355_v43  ;;  %v3169_v33 = vld [vmem:[#allocation2 + $0xa8] sm:$0xf]  ;;  %v3314_v39 = vor.u32 %v4573_v31, %v3313_v30 }
  0x5c   :  { %1463 = vmatpush.bf16.msra.mxu3 %v3678_v3  ;;  %v3611_v47 = vld [vmem:[#allocation2 + $0x430] sm:$0xf0]  ;;  %v3486_v53 = vor.u32 %v4614_v44, %v3483_v45  ;;  %v4578_v56 = vld [vmem:[#allocation2 + $0x204] sm:$0xf]  ;;  %v4601_v38 = vld [vmem:[#allocation2 + $0x2b4] sm:$0xf0] }
  0x5d   :  { %1436 = vmatpush.bf16.msra.mxu0 %v3406_v11  ;;  %v3739_v51 = vld [vmem:[#allocation2 + $0x530] sm:$0xf0]  ;;  %v4610_v58 = vld [vmem:[#allocation2 + $0x304] sm:$0xf]  ;;  %v3614_v59 = vor.u32 %v4646_v46, %v3611_v47  ;;  %v3553_v40 = vld [vmem:[#allocation2 + $0x3a8] sm:$0xf] }
  0x5e   :  { %1450 = vmatpush.bf16.msra.mxu1 %v3534_v12  ;;  %v3339_v57 = vld [vmem:[#allocation2 + $0x210] sm:$0xf0]  ;;  %v4642_v62 = vld [vmem:[#allocation2 + $0x404] sm:$0xf]  ;;  %v3742_v3 = vor.u32 %v4678_v49, %v3739_v51  ;;  %v3297_v44 = vld [vmem:[#allocation2 + $0x1a8] sm:$0xf] }
  0x5f   :  { %1477 = vmatpush.bf16.msrb.mxu2 %v3806_v10  ;;  %v3467_v61 = vld [vmem:[#allocation2 + $0x310] sm:$0xf0]  ;;  %v4706_v2 = vld [vmem:[#allocation2 + $0x604] sm:$0xf]  ;;  %v3342_v7 = vor.u32 %v4578_v56, %v3339_v57  ;;  %v4569_v45 = vld [vmem:[#allocation2 + $0x1b4] sm:$0xf0] }
  0x60   :  { %1464 = vmatpush.bf16.msra.mxu3 %v3662_v16  ;;  %v3595_v63 = vld [vmem:[#allocation2 + $0x410] sm:$0xf0]  ;;  %v3470_v9 = vor.u32 %v4610_v58, %v3467_v61  ;;  %v4674_v10 = vld [vmem:[#allocation2 + $0x504] sm:$0xf]  ;;  %v3153_v47 = vld [vmem:[#allocation2 + $0x88] sm:$0xf] }
  0x61   :  { %1437 = vmatpush.bf16.msra.mxu0 %v3390_v23  ;;  %v3851_v4 = vld [vmem:[#allocation2 + $0x610] sm:$0xf0]  ;;  %v3598_v12 = vor.u32 %v4642_v62, %v3595_v63  ;;  %v3586_v23 = vor.u32 %v4641_v15, %v3585_v14  ;;  %v3409_v51 = vld [vmem:[#allocation2 + $0x288] sm:$0xf]  ;;  %v4629_v57 = vld [vmem:[#allocation2 + $0x394] sm:$0xf0] }
  0x62   :  { %1451 = vmatpush.bf16.msra.mxu1 %v3518_v24  ;;  %v3723_v11 = vld [vmem:[#allocation2 + $0x510] sm:$0xf0]  ;;  %v3854_v16 = vor.u32 %v4706_v2, %v3851_v4  ;;  %v3441_v24 = vld [vmem:[#allocation2 + $0x2c8] sm:$0xf]  ;;  %v4565_v61 = vld [vmem:[#allocation2 + $0x194] sm:$0xf0] }
  0x63   :  { %1478 = vmatpush.bf16.msrb.mxu2 %v3790_v22  ;;  %v3726_v20 = vor.u32 %v4674_v10, %v3723_v11  ;;  %v4541_v22 = vld [vmem:[#allocation2 + $0xd4] sm:$0xf0]  ;;  %v3442_v32 = vor.u32 %v4605_v25, %v3441_v24  ;;  %v3537_v56 = vld [vmem:[#allocation2 + $0x388] sm:$0xf] }
  0x64   :  { %1465 = vmatpush.bf16.msra.mxu3 %v3646_v28  ;;  %v4637_v28 = vld [vmem:[#allocation2 + $0x3d4] sm:$0xf0]  ;;  %v3186_v29 = vor.u32 %v4541_v22, %v3185_v21  ;;  %v3137_v63 = vld [vmem:[#allocation2 + $0x68] sm:$0xf]  ;;  %v3538_v1 = vor.u32 %v4629_v57, %v3537_v56  ;;  %v4543_v56 = vld [vmem:[#allocation2 + $0xec] sm:$0xf] }
  0x65   :  { %1438 = vmatpush.bf16.msra.mxu0 %v3374_v35  ;;  %v3570_v35 = vor.u32 %v4637_v28, %v3569_v27  ;;  %v4529_v0 = vld [vmem:[#allocation2 + $0x74] sm:$0xf0]  ;;  %v3393_v2 = vld [vmem:[#allocation2 + $0x268] sm:$0xf]  ;;  %v3203_v57 = vld [vmem:[#allocation2 + $0xf8] sm:$0xf0] }
  0x66   :  { %1452 = vmatpush.bf16.msra.mxu1 %v3502_v36  ;;  %v3425_v36 = vld [vmem:[#allocation2 + $0x2a8] sm:$0xf]  ;;  %v4625_v6 = vld [vmem:[#allocation2 + $0x374] sm:$0xf0] }
  0x67   :  { %1479 = vmatpush.bf16.msrb.mxu2 %v3774_v34  ;;  %v4537_v34 = vld [vmem:[#allocation2 + $0xb4] sm:$0xf0]  ;;  %v3426_v46 = vor.u32 %v4601_v38, %v3425_v36  ;;  %v3521_v5 = vld [vmem:[#allocation2 + $0x368] sm:$0xf] }
  0x68   :  { %1466 = vmatpush.bf16.msra.mxu3 %v3630_v41  ;;  %v4633_v41 = vld [vmem:[#allocation2 + $0x3b4] sm:$0xf0]  ;;  %v3170_v43 = vor.u32 %v4537_v34, %v3169_v33  ;;  %v3522_v14 = vor.u32 %v4625_v6, %v3521_v5  ;;  %v3377_v15 = vld [vmem:[#allocation2 + $0x248] sm:$0xf]  ;;  %v3206_v6 = vor.u32 %v4543_v56, %v3203_v57 }
  0x69   :  { %1439 = vmatpush.bf16.msra.mxu0 %v3358_v52  ;;  %v3554_v49 = vor.u32 %v4633_v41, %v3553_v40  ;;  %v4597_v52 = vld [vmem:[#allocation2 + $0x294] sm:$0xf0]  ;;  %v3505_v18 = vld [vmem:[#allocation2 + $0x348] sm:$0xf] }
  0x6a   :  { %1453 = vmatpush.bf16.msra.mxu1 %v3486_v53  ;;  %v3298_v53 = vor.u32 %v4569_v45, %v3297_v44  ;;  %v3410_v62 = vor.u32 %v4597_v52, %v3409_v51  ;;  %v4561_v10 = vld [vmem:[#allocation2 + $0x174] sm:$0xf0]  ;;  %v3249_v21 = vld [vmem:[#allocation2 + $0x148] sm:$0xf] }
  0x6b   :  { %1480 = vmatpush.bf16.msrb.mxu2 %v3758_v48  ;;  %v4533_v48 = vld [vmem:[#allocation2 + $0x94] sm:$0xf0]  ;;  %v3105_v24 = vld [vmem:[#allocation2 + $0x28] sm:$0xf] }
  0x6c   :  { %1467 = vmatpush.bf16.msra.mxu3 %v3614_v59  ;;  %v3154_v58 = vor.u32 %v4533_v48, %v3153_v47  ;;  %v3281_v59 = vld [vmem:[#allocation2 + $0x188] sm:$0xf]  ;;  %v4557_v22 = vld [vmem:[#allocation2 + $0x154] sm:$0xf0] }
  0x6d   :  { %1440 = vmatpush.bf16.msra.mxu0 %v3342_v7  ;;  %v3282_v4 = vor.u32 %v4565_v61, %v3281_v59  ;;  %v3138_v7 = vor.u32 %v4529_v0, %v3137_v63  ;;  %v4521_v25 = vld [vmem:[#allocation2 + $0x34] sm:$0xf0]  ;;  %v3361_v27 = vld [vmem:[#allocation2 + $0x228] sm:$0xf] }
  0x6e   :  { %1454 = vmatpush.bf16.msra.mxu1 %v3470_v9  ;;  %v3265_v9 = vld [vmem:[#allocation2 + $0x168] sm:$0xf]  ;;  %v4585_v28 = vld [vmem:[#allocation2 + $0x234] sm:$0xf0] }
  0x6f   :  { %1481 = vmatpush.bf16.msrb.mxu2 %v3742_v3  ;;  %v4593_v3 = vld [vmem:[#allocation2 + $0x274] sm:$0xf0]  ;;  %v3266_v17 = vor.u32 %v4561_v10, %v3265_v9  ;;  %v3489_v30 = vld [vmem:[#allocation2 + $0x328] sm:$0xf]  ;;  %v3362_v36 = vor.u32 %v4585_v28, %v3361_v27  ;;  %v4539_v9 = vld [vmem:[#allocation2 + $0xcc] sm:$0xf] }
  0x70   :  { %1468 = vmatpush.bf16.msra.mxu3 %v3598_v12  ;;  %1441 = vmatmul.bf16.vlgmr.msra.gmra.mxu0 %v5033_v54  ;;  %v3394_v11 = vor.u32 %v4593_v3, %v3393_v2  ;;  %v3121_v12 = vld [vmem:[#allocation2 + $0x48] sm:$0xf]  ;;  %v4617_v31 = vld [vmem:[#allocation2 + $0x334] sm:$0xf0]  ;;  %v4575_v3 = vld [vmem:[#allocation2 + $0x1ec] sm:$0xf] }
  0x71   :  { %1531 = vmatpush.bf16.msrb.mxu0 %v3458_v19  ;;  %1455 = vmatmul.bf16.vlgmr.msra.gmra.mxu1 %v5037_v60  ;;  %v4621_v19 = vld [vmem:[#allocation2 + $0x354] sm:$0xf0]  ;;  %v3233_v33 = vld [vmem:[#allocation2 + $0x128] sm:$0xf]  ;;  %v3490_v41 = vor.u32 %v4617_v31, %v3489_v30  ;;  %v3187_v10 = vld [vmem:[#allocation2 + $0xd8] sm:$0xf0] }
  0x72   :  { %1503 = vmatpush.bf16.msrb.mxu1 %v3202_v13  ;;  %v4525_v13 = vld [vmem:[#allocation2 + $0x54] sm:$0xf0]  ;;  %v3345_v44 = vld [vmem:[#allocation2 + $0x208] sm:$0xf]  ;;  %v3299_v30 = vld [vmem:[#allocation2 + $0x1b8] sm:$0xf0] }
  0x73   :  { %1482 = vmatpush.bf16.msrb.mxu2 %v3726_v20  ;;  %1469 = vmatmul.bf16.vlgmr.msra.gmra.mxu3 %v5073_v37  ;;  %v3122_v20 = vor.u32 %v4525_v13, %v3121_v12  ;;  %v4553_v34 = vld [vmem:[#allocation2 + $0x134] sm:$0xf0]  ;;  %v3841_v61 = vld [vmem:[#allocation2 + $0x5e8] sm:$0xf] }
  0x74   :  { %1496 = vmatpush.bf16.msrb.mxu3 %v3854_v16  ;;  %v4589_v16 = vld [vmem:[#allocation2 + $0x254] sm:$0xf0]  ;;  %v3234_v47 = vor.u32 %v4553_v34, %v3233_v33  ;;  %v3697_v63 = vld [vmem:[#allocation2 + $0x4c8] sm:$0xf]  ;;  %v4531_v33 = vld [vmem:[#allocation2 + $0x8c] sm:$0xf] }
  0x75   :  { %1532 = vmatpush.bf16.msrb.mxu0 %v3442_v32  ;;  %v3106_v32 = vor.u32 %v4521_v25, %v3105_v24  ;;  %v4517_v38 = vld [vmem:[#allocation2 + $0x14] sm:$0xf0]  ;;  %v3825_v13 = vld [vmem:[#allocation2 + $0x5c8] sm:$0xf]  ;;  %v3155_v34 = vld [vmem:[#allocation2 + $0x98] sm:$0xf0] }
  0x76   :  { %1504 = vmatpush.bf16.msrb.mxu1 %v3186_v29  ;;  %1483 = vmatmul.bf16.vlgmr.msrb.gmra.mxu2 %v5075_v42  ;;  %v3250_v29 = vor.u32 %v4557_v22, %v3249_v21  ;;  %v4673_v40 = vld [vmem:[#allocation2 + $0x4f4] sm:$0xf0]  ;;  %v4535_v21 = vld [vmem:[#allocation2 + $0xac] sm:$0xf]  ;;  %v3171_v22 = vld [vmem:[#allocation2 + $0xb8] sm:$0xf0] }
  0x77   :  { %1545 = vmatpush.bf16.msra.mxu2 %v3586_v23  ;;  %v3378_v23 = vor.u32 %v4589_v16, %v3377_v15  ;;  %v4581_v45 = vld [vmem:[#allocation2 + $0x214] sm:$0xf0]  ;;  %v3681_v15 = vld [vmem:[#allocation2 + $0x4a8] sm:$0xf]  ;;  %v3174_v31 = vor.u32 %v4535_v21, %v3171_v22  ;;  %v3235_v21 = vld [vmem:[#allocation2 + $0x138] sm:$0xf0] }
  0x78   :  { %1517 = vmatpush.bf16.msra.mxu3 %v3330_v26  ;;  %v3506_v26 = vor.u32 %v4621_v19, %v3505_v18  ;;  %v4613_v48 = vld [vmem:[#allocation2 + $0x314] sm:$0xf0]  ;;  %v3346_v59 = vor.u32 %v4581_v45, %v3345_v44  ;;  %v3315_v18 = vld [vmem:[#allocation2 + $0x1d8] sm:$0xf0]  ;;  %v3190_v19 = vor.u32 %v4539_v9, %v3187_v10  ;;  %v3809_v25 = vld [vmem:[#allocation2 + $0x5a8] sm:$0xf]  ;;  %v3158_v45 = vor.u32 %v4531_v33, %v3155_v34 }
  0x79   :  { %1533 = vmatpush.bf16.msrb.mxu0 %v3426_v46  ;;  %v3473_v46 = vld [vmem:[#allocation2 + $0x308] sm:$0xf]  ;;  %v4709_v51 = vld [vmem:[#allocation2 + $0x614] sm:$0xf0]  ;;  %v3283_v44 = vld [vmem:[#allocation2 + $0x198] sm:$0xf0] }
  0x7a   :  { %1505 = vmatpush.bf16.msrb.mxu1 %v3170_v43  ;;  %v3217_v43 = vld [vmem:[#allocation2 + $0x108] sm:$0xf]  ;;  %v3474_v0 = vor.u32 %v4613_v48, %v3473_v46  ;;  %v4665_v16 = vld [vmem:[#allocation2 + $0x4b4] sm:$0xf0]  ;;  %v3139_v48 = vld [vmem:[#allocation2 + $0x78] sm:$0xf0] }
  0x7b   :  { %1546 = vmatpush.bf16.msra.mxu2 %v3570_v35  ;;  %v3089_v35 = vld [vmem:[#allocation2 + $0x8] sm:$0xf]  ;;  %v4661_v28 = vld [vmem:[#allocation2 + $0x494] sm:$0xf0]  ;;  %v3251_v9 = vld [vmem:[#allocation2 + $0x158] sm:$0xf0] }
  0x7c   :  { %1518 = vmatpush.bf16.msra.mxu3 %v3314_v39  ;;  %v3713_v39 = vld [vmem:[#allocation2 + $0x4e8] sm:$0xf]  ;;  %v3090_v52 = vor.u32 %v4517_v38, %v3089_v35  ;;  %v4653_v57 = vld [vmem:[#allocation2 + $0x454] sm:$0xf0]  ;;  %v3587_v33 = vld [vmem:[#allocation2 + $0x3f8] sm:$0xf0] }
  0x7d   :  { %1534 = vmatpush.bf16.msrb.mxu0 %v3410_v62  ;;  %v4705_v62 = vld [vmem:[#allocation2 + $0x5f4] sm:$0xf0]  ;;  %v3665_v27 = vld [vmem:[#allocation2 + $0x488] sm:$0xf] }
  0x7e   :  { %1506 = vmatpush.bf16.msrb.mxu1 %v3154_v58  ;;  %v3714_v58 = vor.u32 %v4673_v40, %v3713_v39  ;;  %v3666_v35 = vor.u32 %v4661_v28, %v3665_v27  ;;  %v3793_v38 = vld [vmem:[#allocation2 + $0x588] sm:$0xf]  ;;  %v4693_v39 = vld [vmem:[#allocation2 + $0x594] sm:$0xf0]  ;;  %v4515_v27 = vld [vmem:[#allocation2 + $0xc] sm:$0xf] }
  0x7f   :  { %1547 = vmatpush.bf16.msra.mxu2 %v3554_v49  ;;  %v3857_v49 = vld [vmem:[#allocation2 + $0x608] sm:$0xf]  ;;  %v3794_v46 = vor.u32 %v4693_v39, %v3793_v38  ;;  %v3091_v28 = vld [vmem:[#allocation2 + $0x18] sm:$0xf0]  ;;  %v4603_v38 = vld [vmem:[#allocation2 + $0x2cc] sm:$0xf] }
  0x80   :  { %1519 = vmatpush.bf16.msra.mxu3 %v3298_v53  ;;  %v4549_v53 = vld [vmem:[#allocation2 + $0x114] sm:$0xf0]  ;;  %v3858_v2 = vor.u32 %v4709_v51, %v3857_v49  ;;  %v3649_v40 = vld [vmem:[#allocation2 + $0x468] sm:$0xf]  ;;  %v3094_v39 = vor.u32 %v4515_v27, %v3091_v28  ;;  %v3523_v28 = vld [vmem:[#allocation2 + $0x378] sm:$0xf0] }
  0x81   :  { %1535 = vmatpush.bf16.msrb.mxu0 %v3394_v11  ;;  %v3218_v5 = vor.u32 %v4549_v53, %v3217_v43  ;;  %v4563_v43 = vld [vmem:[#allocation2 + $0x18c] sm:$0xf]  ;;  %v4689_v53 = vld [vmem:[#allocation2 + $0x574] sm:$0xf0]  ;;  %v3633_v56 = vld [vmem:[#allocation2 + $0x448] sm:$0xf] }
  0x82   :  { %1507 = vmatpush.bf16.msrb.mxu1 %v3138_v7  ;;  %v3842_v7 = vor.u32 %v4705_v62, %v3841_v61  ;;  %v3286_v51 = vor.u32 %v4563_v43, %v3283_v44  ;;  %v3219_v43 = vld [vmem:[#allocation2 + $0x118] sm:$0xf0] }
  0x83   :  { %1548 = vmatpush.bf16.msra.mxu2 %v3538_v1  ;;  %3864 = vmatmul.msk.bf16.vlgmr.msrb.gmra.mxu3 %vm1303_vm0, %v5057_v50  ;;  %v4669_v1 = vld [vmem:[#allocation2 + $0x4d4] sm:$0xf0] }
  0x84   :  { %1520 = vmatpush.bf16.msra.mxu3 %v3282_v4  ;;  %v3331_v4 = vld [vmem:[#allocation2 + $0x1f8] sm:$0xf0]  ;;  %v3698_v11 = vor.u32 %v4669_v1, %v3697_v63  ;;  %v4523_v63 = vld [vmem:[#allocation2 + $0x4c] sm:$0xf]  ;;  %v3634_v1 = vor.u32 %v4653_v57, %v3633_v56 }
  0x85   :  { %1536 = vmatpush.bf16.msrb.mxu0 %v3378_v23  ;;  %v3334_v12 = vor.u32 %v4575_v3, %v3331_v4  ;;  %v3682_v23 = vor.u32 %v4665_v16, %v3681_v15  ;;  %v3761_v3 = vld [vmem:[#allocation2 + $0x548] sm:$0xf]  ;;  %v4685_v4 = vld [vmem:[#allocation2 + $0x554] sm:$0xf0]  ;;  %v4667_v56 = vld [vmem:[#allocation2 + $0x4cc] sm:$0xf] }
  0x86   :  { %1508 = vmatpush.bf16.msrb.mxu1 %v3122_v20  ;;  %v3745_v16 = vld [vmem:[#allocation2 + $0x528] sm:$0xf]  ;;  %v3699_v57 = vld [vmem:[#allocation2 + $0x4d8] sm:$0xf0] }
  0x87   :  { %1549 = vmatpush.bf16.msra.mxu2 %v3522_v14  ;;  %v4701_v14 = vld [vmem:[#allocation2 + $0x5d4] sm:$0xf0] }
  0x88   :  { %1521 = vmatpush.bf16.msra.mxu3 %v3266_v17  ;;  %v4571_v17 = vld [vmem:[#allocation2 + $0x1cc] sm:$0xf]  ;;  %v3826_v20 = vor.u32 %v4701_v14, %v3825_v13  ;;  %v3107_v13 = vld [vmem:[#allocation2 + $0x38] sm:$0xf0] }
  0x89   :  { %1537 = vmatpush.bf16.msrb.mxu0 %v3362_v36  ;;  %v3318_v24 = vor.u32 %v4571_v17, %v3315_v18  ;;  %v4681_v17 = vld [vmem:[#allocation2 + $0x534] sm:$0xf0]  ;;  %v3601_v18 = vld [vmem:[#allocation2 + $0x408] sm:$0xf] }
  0x8a   :  { %1509 = vmatpush.bf16.msrb.mxu1 %v3106_v32 }
  0x8b   :  { %1550 = vmatpush.bf16.msra.mxu2 %v3506_v26  ;;  %v4697_v26 = vld [vmem:[#allocation2 + $0x5b4] sm:$0xf0] }
  0x8c   :  { %1522 = vmatpush.bf16.msra.mxu3 %v3250_v29  ;;  %v4567_v29 = vld [vmem:[#allocation2 + $0x1ac] sm:$0xf]  ;;  %v3810_v32 = vor.u32 %v4697_v26, %v3809_v25  ;;  %v3746_v25 = vor.u32 %v4681_v17, %v3745_v16  ;;  %v3729_v26 = vld [vmem:[#allocation2 + $0x508] sm:$0xf]  ;;  %v3539_v17 = vld [vmem:[#allocation2 + $0x398] sm:$0xf0] }
  0x8d   :  { %1538 = vmatpush.bf16.msrb.mxu0 %v3346_v59  ;;  %v3302_v36 = vor.u32 %v4567_v29, %v3299_v30  ;;  %v3267_v59 = vld [vmem:[#allocation2 + $0x178] sm:$0xf0] }
  0x8e   :  { %1510 = vmatpush.bf16.msrb.mxu1 %v3090_v52  ;;  %v3777_v52 = vld [vmem:[#allocation2 + $0x568] sm:$0xf] }
  0x8f   :  { %1551 = vmatpush.bf16.msra.mxu2 %v3490_v41  ;;  %v4657_v41 = vld [vmem:[#allocation2 + $0x474] sm:$0xf0]  ;;  %v3778_v62 = vor.u32 %v4689_v53, %v3777_v52  ;;  %v3571_v53 = vld [vmem:[#allocation2 + $0x3d8] sm:$0xf0] }
  0x90   :  { %1523 = vmatpush.bf16.msra.mxu3 %v3234_v47  ;;  %1539 = vmatmul.bf16.vlgmr.msrb.gmra.mxu0 %v5033_v54  ;;  %v4527_v47 = vld [vmem:[#allocation2 + $0x6c] sm:$0xf]  ;;  %v3650_v49 = vor.u32 %v4657_v41, %v3649_v40  ;;  %v3443_v40 = vld [vmem:[#allocation2 + $0x2d8] sm:$0xf0] }
  0x91   :  { %1594 = vmatpush.bf16.msra.mxu0 %v3858_v2  ;;  %1511 = vmatmul.bf16.vlgmr.msrb.gmra.mxu1 %v5035_v55  ;;  %v3142_v61 = vor.u32 %v4527_v47, %v3139_v48  ;;  %v4547_v41 = vld [vmem:[#allocation2 + $0x10c] sm:$0xf] }
  0x92   :  { %1559 = vmatpush.bf16.msra.mxu1 %v3714_v58  ;;  %v4559_v58 = vld [vmem:[#allocation2 + $0x16c] sm:$0xf]  ;;  %v3222_v52 = vor.u32 %v4547_v41, %v3219_v43  ;;  %v3635_v43 = vld [vmem:[#allocation2 + $0x458] sm:$0xf0] }
  0x93   :  { %1552 = vmatpush.bf16.msra.mxu2 %v3474_v0  ;;  %v3123_v0 = vld [vmem:[#allocation2 + $0x58] sm:$0xf0]  ;;  %v3270_v2 = vor.u32 %v4559_v58, %v3267_v59  ;;  %v4599_v59 = vld [vmem:[#allocation2 + $0x2ac] sm:$0xf] }
  0x94   :  { %1524 = vmatpush.bf16.msra.mxu3 %v3218_v5  ;;  %v3617_v5 = vld [vmem:[#allocation2 + $0x428] sm:$0xf]  ;;  %v3126_v10 = vor.u32 %v4523_v63, %v3123_v0  ;;  %v3827_v63 = vld [vmem:[#allocation2 + $0x5d8] sm:$0xf0]  ;;  %v4651_v41 = vld [vmem:[#allocation2 + $0x44c] sm:$0xf] }
  0x95   :  { %1615 = vmatpush.bf16.msrb.mxu0 %v3334_v12  ;;  %v4519_v12 = vld [vmem:[#allocation2 + $0x2c] sm:$0xf] }
  0x96   :  { %1560 = vmatpush.bf16.msra.mxu1 %v3698_v11  ;;  %1553 = vmatmul.bf16.vlgmr.msra.gmra.mxu2 %v5037_v60  ;;  %v3762_v11 = vor.u32 %v4685_v4, %v3761_v3  ;;  %v3110_v22 = vor.u32 %v4519_v12, %v3107_v13  ;;  %v3555_v4 = vld [vmem:[#allocation2 + $0x3b8] sm:$0xf0] }
  0x97   :  { %1601 = vmatpush.bf16.msrb.mxu2 %v3206_v6  ;;  %1525 = vmatmul.bf16.vlgmr.msra.gmra.mxu3 %v5047_v8  ;;  %v4649_v6 = vld [vmem:[#allocation2 + $0x434] sm:$0xf0]  ;;  %v3811_v12 = vld [vmem:[#allocation2 + $0x5b8] sm:$0xf0] }
  0x98   :  { %1573 = vmatpush.bf16.msrb.mxu3 %v3842_v7  ;;  %v4555_v7 = vld [vmem:[#allocation2 + $0x14c] sm:$0xf]  ;;  %v3618_v14 = vor.u32 %v4649_v6, %v3617_v5  ;;  %v3683_v6 = vld [vmem:[#allocation2 + $0x4b8] sm:$0xf0] }
  0x99   :  { %1616 = vmatpush.bf16.msrb.mxu0 %v3318_v24  ;;  %v3254_v15 = vor.u32 %v4555_v7, %v3251_v9  ;;  %v3459_v24 = vld [vmem:[#allocation2 + $0x2f8] sm:$0xf0]  ;;  %v4663_v5 = vld [vmem:[#allocation2 + $0x4ac] sm:$0xf] }
  0x9a   :  { %1561 = vmatpush.bf16.msra.mxu1 %v3682_v23  ;;  %v4607_v23 = vld [vmem:[#allocation2 + $0x2ec] sm:$0xf] }
  0x9b   :  { %1602 = vmatpush.bf16.msrb.mxu2 %v3190_v19  ;;  %v4645_v19 = vld [vmem:[#allocation2 + $0x414] sm:$0xf0]  ;;  %v3462_v34 = vor.u32 %v4607_v23, %v3459_v24  ;;  %v4595_v9 = vld [vmem:[#allocation2 + $0x28c] sm:$0xf] }
  0x9c   :  { %1574 = vmatpush.bf16.msrb.mxu3 %v3826_v20  ;;  %v4551_v20 = vld [vmem:[#allocation2 + $0x12c] sm:$0xf]  ;;  %v3602_v29 = vor.u32 %v4645_v19, %v3601_v18  ;;  %v3667_v19 = vld [vmem:[#allocation2 + $0x498] sm:$0xf0] }
  0x9d   :  { %1617 = vmatpush.bf16.msrb.mxu0 %v3302_v36  ;;  %v3238_v30 = vor.u32 %v4551_v20, %v3235_v21  ;;  %v3715_v36 = vld [vmem:[#allocation2 + $0x4f8] sm:$0xf0]  ;;  %v4659_v18 = vld [vmem:[#allocation2 + $0x48c] sm:$0xf] }
  0x9e   :  { %1562 = vmatpush.bf16.msra.mxu1 %v3666_v35  ;;  %v4671_v35 = vld [vmem:[#allocation2 + $0x4ec] sm:$0xf] }
  0x9f   :  { %1603 = vmatpush.bf16.msrb.mxu2 %v3174_v31  ;;  %v4677_v31 = vld [vmem:[#allocation2 + $0x514] sm:$0xf0]  ;;  %v3718_v48 = vor.u32 %v4671_v35, %v3715_v36  ;;  %v4591_v21 = vld [vmem:[#allocation2 + $0x26c] sm:$0xf] }
  0xa0   :  { %1575 = vmatpush.bf16.msrb.mxu3 %v3810_v32  ;;  %3865 = vmatmul.msk.bf16.vlgmr.msra.gmra.mxu0 %vm1303_vm0, %v5057_v50  ;;  %v4639_v32 = vld [vmem:[#allocation2 + $0x3ec] sm:$0xf]  ;;  %v3730_v44 = vor.u32 %v4677_v31, %v3729_v26 }
  0xa1   :  { %1618 = vmatpush.bf16.msrb.mxu0 %v3286_v51  ;;  %v3590_v47 = vor.u32 %v4639_v32, %v3587_v33  ;;  %v3446_v51 = vor.u32 %v4603_v38, %v3443_v40  ;;  %v4691_v23 = vld [vmem:[#allocation2 + $0x58c] sm:$0xf]  ;;  %v3507_v40 = vld [vmem:[#allocation2 + $0x358] sm:$0xf0] }
  0xa2   :  { %1563 = vmatpush.bf16.msra.mxu1 %v3650_v49  ;;  %v4635_v49 = vld [vmem:[#allocation2 + $0x3cc] sm:$0xf] }
  0xa3   :  { %1604 = vmatpush.bf16.msrb.mxu2 %v3158_v45  ;;  %v4703_v45 = vld [vmem:[#allocation2 + $0x5ec] sm:$0xf]  ;;  %v3574_v0 = vor.u32 %v4635_v49, %v3571_v53 }
  0xa4   :  { %1576 = vmatpush.bf16.msrb.mxu3 %v3794_v46  ;;  %v3843_v46 = vld [vmem:[#allocation2 + $0x5f8] sm:$0xf0]  ;;  %v4623_v26 = vld [vmem:[#allocation2 + $0x36c] sm:$0xf] }
  0xa5   :  { %1619 = vmatpush.bf16.msrb.mxu0 %v3270_v2  ;;  %v3846_v58 = vor.u32 %v4703_v45, %v3843_v46  ;;  %v4631_v2 = vld [vmem:[#allocation2 + $0x3ac] sm:$0xf]  ;;  %v3526_v35 = vor.u32 %v4623_v26, %v3523_v28  ;;  %v3363_v46 = vld [vmem:[#allocation2 + $0x238] sm:$0xf0]  ;;  %v4736_v28 = vld [vmem:[#allocation4 + $0xcc] sm:$0xf0] }
  0xa6   :  { %1564 = vmatpush.bf16.msra.mxu1 %v3634_v1  ;;  %v3702_v1 = vor.u32 %v4667_v56, %v3699_v57  ;;  %v3558_v13 = vor.u32 %v4631_v2, %v3555_v4  ;;  %v4587_v32 = vld [vmem:[#allocation2 + $0x24c] sm:$0xf]  ;;  %v3491_v57 = vld [vmem:[#allocation2 + $0x338] sm:$0xf0] }
  0xa7   :  { %1605 = vmatpush.bf16.msrb.mxu2 %v3142_v61  ;;  %v3427_v61 = vld [vmem:[#allocation2 + $0x2b8] sm:$0xf0]  ;;  %v4687_v33 = vld [vmem:[#allocation2 + $0x56c] sm:$0xf] }
  0xa8   :  { %1577 = vmatpush.bf16.msrb.mxu3 %v3778_v62  ;;  %v4699_v62 = vld [vmem:[#allocation2 + $0x5cc] sm:$0xf]  ;;  %v3430_v3 = vor.u32 %v4599_v59, %v3427_v61  ;;  %v3619_v59 = vld [vmem:[#allocation2 + $0x438] sm:$0xf0] }
  0xa9   :  { %1620 = vmatpush.bf16.msrb.mxu0 %v3254_v15  ;;  %v3830_v7 = vor.u32 %v4699_v62, %v3827_v63  ;;  %v4627_v15 = vld [vmem:[#allocation2 + $0x38c] sm:$0xf]  ;;  %v3747_v2 = vld [vmem:[#allocation2 + $0x538] sm:$0xf0] }
  0xaa   :  { %1565 = vmatpush.bf16.msra.mxu1 %v3618_v14  ;;  %v3686_v14 = vor.u32 %v4663_v5, %v3683_v6  ;;  %v3542_v24 = vor.u32 %v4627_v15, %v3539_v17  ;;  %v4619_v38 = vld [vmem:[#allocation2 + $0x34c] sm:$0xf]  ;;  %v3859_v4 = vld [vmem:[#allocation2 + $0x618] sm:$0xf0]  ;;  %v4740_v17 = vld [vmem:[#allocation4 + $0xec] sm:$0xf0] }
  0xab   :  { %1606 = vmatpush.bf16.msrb.mxu2 %v3126_v10  ;;  %v3411_v10 = vld [vmem:[#allocation2 + $0x298] sm:$0xf0]  ;;  %v4583_v45 = vld [vmem:[#allocation2 + $0x22c] sm:$0xf]  ;;  %v3510_v49 = vor.u32 %v4619_v38, %v3507_v40  ;;  %v3949_v38 = vld [vmem:[#allocation4 + $0xa0] sm:$0xf] }
  0xac   :  { %1578 = vmatpush.bf16.msrb.mxu3 %v3762_v11  ;;  %v4695_v11 = vld [vmem:[#allocation2 + $0x5ac] sm:$0xf]  ;;  %v3414_v16 = vor.u32 %v4595_v9, %v3411_v10  ;;  %v3366_v56 = vor.u32 %v4583_v45, %v3363_v46  ;;  %v5102_v9 = vld [vmem:[%s5174_s2] sm:$0xf] }
  0xad   :  { %1621 = vmatpush.bf16.msrb.mxu0 %v3238_v30  ;;  %v3814_v20 = vor.u32 %v4695_v11, %v3811_v12  ;;  %v3651_v30 = vld [vmem:[#allocation2 + $0x478] sm:$0xf0]  ;;  %v4579_v63 = vld [vmem:[#allocation2 + $0x20c] sm:$0xf] }
  0xae   :  { %1566 = vmatpush.bf16.msra.mxu1 %v3602_v29  ;;  %v4655_v29 = vld [vmem:[#allocation2 + $0x46c] sm:$0xf]  ;;  %v3475_v12 = vld [vmem:[#allocation2 + $0x318] sm:$0xf0] }
  0xaf   :  { %1607 = vmatpush.bf16.msrb.mxu2 %v3110_v22  ;;  %v3395_v22 = vld [vmem:[#allocation2 + $0x278] sm:$0xf0]  ;;  %v3654_v36 = vor.u32 %v4655_v29, %v3651_v30 }
  0xb0   :  { %1579 = vmatpush.bf16.msrb.mxu3 %v3746_v25  ;;  %v3670_v25 = vor.u32 %v4659_v18, %v3667_v19  ;;  %v3398_v27 = vor.u32 %v4591_v21, %v3395_v22  ;;  %v4675_v18 = vld [vmem:[#allocation2 + $0x50c] sm:$0xf]  ;;  %v4109_v21 = vld [vmem:[#allocation4 + $0x1e0] sm:$0xf]  ;;  %v4772_v22 = vld [vmem:[#allocation4 + $0x1ec] sm:$0xf0] }
  0xb1   :  { %1567 = vmatmul.bf16.vlgmr.msra.gmra.mxu1 %v5073_v37  ;;  %1622 = vmatpush.bf16.msrb.mxu0 %v3222_v52  ;;  %v4615_v52 = vld [vmem:[#allocation2 + $0x32c] sm:$0xf]  ;;  %v1316_v53 = vpop.f32.mrf.mxu0  ;;  %v4110_v29 = vor.u32 %v4772_v22, %v4109_v21  ;;  %v4748_v21 = vld [vmem:[#allocation4 + $0x12c] sm:$0xf0] }
  0xb2   :  { %1629 = vmatpush.bf16.msrb.mxu1 %v3462_v34  ;;  %v3779_v34 = vld [vmem:[#allocation2 + $0x578] sm:$0xf0]  ;;  %v3494_v5 = vor.u32 %v4615_v52, %v3491_v57  ;;  %v4061_v52 = vld [vmem:[#allocation4 + $0x180] sm:$0xf] }
  0xb3   :  { %1608 = vmatpush.bf16.msrb.mxu2 %v3094_v39 }
  0xb4   :  { %1580 = vmatpush.bf16.msrb.mxu3 %v3730_v44  ;;  %1623 = vmatmul.bf16.vlgmr.msrb.gmra.mxu0 %v5047_v8  ;;  %v3379_v8 = vld [vmem:[#allocation2 + $0x258] sm:$0xf0]  ;;  %v3782_v44 = vor.u32 %v4687_v33, %v3779_v34  ;;  %v5097_v61 = vpop.f32.mrf.mxu1 }
  0xb5   :  { %1671 = vmatpush.bf16.msra.mxu0 %v3846_v58  ;;  %v3382_v39 = vor.u32 %v4587_v32, %v3379_v8  ;;  %v4647_v58 = vld [vmem:[#allocation2 + $0x42c] sm:$0xf]  ;;  %v5104_v10 = vpop.f32.mrf.mxu2  ;;  %v4768_v32 = vld [vmem:[#allocation4 + $0x1cc] sm:$0xf0] }
  0xb6   :  { %1630 = vmatpush.bf16.msrb.mxu1 %v3446_v51  ;;  %1609 = vmatmul.bf16.vlgmr.msrb.gmra.mxu2 %v5035_v55  ;;  %v3795_v55 = vld [vmem:[#allocation2 + $0x598] sm:$0xf0]  ;;  %v3638_v51 = vor.u32 %v4651_v41, %v3635_v43  ;;  %v3622_v6 = vor.u32 %v4647_v58, %v3619_v59  ;;  %v1358_v33 = vpop.f32.mrf.mxu3  ;;  %v4077_v43 = vld [vmem:[#allocation4 + $0x1a0] sm:$0xf]  ;;  %v4724_v59 = vld [vmem:[#allocation4 + $0x6c] sm:$0xf0] }
  0xb7   :  { %1657 = vmatpush.bf16.msra.mxu2 %v3718_v48  ;;  %1581 = vmatmul.bf16.vlgmr.msrb.gmra.mxu3 %v5075_v42  ;;  %v3798_v31 = vor.u32 %v4691_v23, %v3795_v55  ;;  %v3763_v48 = vld [vmem:[#allocation2 + $0x558] sm:$0xf0]  ;;  %v3917_v58 = vld [vmem:[#allocation4 + $0x60] sm:$0xf] }
  0xb8   :  { %1643 = vmatpush.bf16.msra.mxu3 %v3590_v47  ;;  %v4683_v47 = vld [vmem:[#allocation2 + $0x54c] sm:$0xf] }
  0xb9   :  { %1672 = vmatpush.bf16.msra.mxu0 %v3830_v7  ;;  %v3766_v62 = vor.u32 %v4683_v47, %v3763_v48  ;;  %v4611_v7 = vld [vmem:[#allocation2 + $0x30c] sm:$0xf]  ;;  %v1318_v30 = vpop.f32.mrf.mxu0  ;;  %v3933_v47 = vld [vmem:[#allocation4 + $0x80] sm:$0xf]  ;;  %v4728_v48 = vld [vmem:[#allocation4 + $0x8c] sm:$0xf0] }
  0xba   :  { %1631 = vmatpush.bf16.msrb.mxu1 %v3430_v3  ;;  %v4707_v3 = vld [vmem:[#allocation2 + $0x60c] sm:$0xf]  ;;  %v3478_v23 = vor.u32 %v4611_v7, %v3475_v12 }
  0xbb   :  { %1658 = vmatpush.bf16.msra.mxu2 %v3702_v1  ;;  %v4679_v1 = vld [vmem:[#allocation2 + $0x52c] sm:$0xf]  ;;  %v3862_v19 = vor.u32 %v4707_v3, %v3859_v4  ;;  %v3901_v4 = vld [vmem:[#allocation4 + $0x40] sm:$0xf] }
  0xbc   :  { %1644 = vmatpush.bf16.msra.mxu3 %v3574_v0  ;;  %v3347_v0 = vld [vmem:[#allocation2 + $0x218] sm:$0xf0]  ;;  %v3750_v15 = vor.u32 %v4679_v1, %v3747_v2  ;;  %v1332_v8 = vpop.f32.mrf.mxu1  ;;  %v3918_v1 = vor.u32 %v4724_v59, %v3917_v58  ;;  %v4800_v58 = vld [vmem:[#allocation4 + $0x2cc] sm:$0xf0]  ;;  %v4726_v59 = vld [vmem:[#allocation4 + $0x84] sm:$0xf] }
  0xbd   :  { %1673 = vmatpush.bf16.msra.mxu0 %v3814_v20  ;;  %v3350_v11 = vor.u32 %v4579_v63, %v3347_v0  ;;  %v3731_v20 = vld [vmem:[#allocation2 + $0x518] sm:$0xf0]  ;;  %v1346_v41 = vpop.f32.mrf.mxu2  ;;  %v4045_v63 = vld [vmem:[#allocation4 + $0x160] sm:$0xf]  ;;  %v4756_v0 = vld [vmem:[#allocation4 + $0x16c] sm:$0xf0] }
  0xbe   :  { %1632 = vmatpush.bf16.msrb.mxu1 %v3414_v16  ;;  %v3981_v16 = vld [vmem:[#allocation4 + $0xe0] sm:$0xf]  ;;  %v3734_v26 = vor.u32 %v4675_v18, %v3731_v20  ;;  %v4716_v18 = vld [vmem:[#allocation4 + $0x2c] sm:$0xf0] }
  0xbf   :  { %1659 = vmatpush.bf16.msra.mxu2 %v3686_v14  ;;  %v3603_v14 = vld [vmem:[#allocation2 + $0x418] sm:$0xf0]  ;;  %v4013_v20 = vld [vmem:[#allocation4 + $0x120] sm:$0xf] }
  0xc0   :  { %1645 = vmatpush.bf16.msra.mxu3 %v3558_v13  ;;  %v4643_v13 = vld [vmem:[#allocation2 + $0x40c] sm:$0xf] }
  0xc1   :  { %1674 = vmatpush.bf16.msra.mxu0 %v3798_v31  ;;  %v3606_v55 = vor.u32 %v4643_v13, %v3603_v14  ;;  %v4093_v31 = vld [vmem:[#allocation4 + $0x1c0] sm:$0xf] }
  0xc2   :  { %1633 = vmatpush.bf16.msrb.mxu1 %v3398_v27  ;;  %v3965_v27 = vld [vmem:[#allocation4 + $0xc0] sm:$0xf]  ;;  %v4094_v40 = vor.u32 %v4768_v32, %v4093_v31  ;;  %v4770_v32 = vld [vmem:[#allocation4 + $0x1e4] sm:$0xf] }
  0xc3   :  { %1660 = vmatpush.bf16.msra.mxu2 %v3670_v25  ;;  %v280_v25 = vperm.slane %v5102_v9, 0  ;;  %v3966_v34 = vor.u32 %v4736_v28, %v3965_v27  ;;  %v4738_v27 = vld [vmem:[#allocation4 + $0xe4] sm:$0xf]  ;;  %v3983_v28 = vld [vmem:[#allocation4 + $0xf0] sm:$0xf0] }
  0xc4   :  { %1646 = vmatpush.bf16.msra.mxu3 %v3542_v24  ;;  %v3982_v24 = vor.u32 %v4740_v17, %v3981_v16  ;;  %v3885_v17 = vld [vmem:[#allocation4 + $0x20] sm:$0xf] }
  0xc5   :  { %1675 = vmatpush.bf16.msra.mxu0 %v3782_v44  ;;  %v4764_v44 = vld [vmem:[#allocation4 + $0x1ac] sm:$0xf0] }
  0xc6   :  { %1634 = vmatpush.bf16.msrb.mxu1 %v3382_v39  ;;  %v4732_v39 = vld [vmem:[#allocation4 + $0xac] sm:$0xf0] }
  0xc7   :  { %1661 = vmatpush.bf16.msra.mxu2 %v3654_v36  ;;  %v1319_v36 = vadd.f32 %v1318_v30, %v280_v25  ;;  %v4744_v30 = vld [vmem:[#allocation4 + $0x10c] sm:$0xf0] }
  0xc8   :  { %1647 = vmatpush.bf16.msra.mxu3 %v3526_v35  ;;  %v1317_v35 = vadd.f32 %v1316_v53, %v280_v25  ;;  %v4760_v53 = vld [vmem:[#allocation4 + $0x18c] sm:$0xf0]  ;;  %v3869_v25 = vld [vmem:[#allocation4] sm:$0xf] }
  0xc9   :  { %1676 = vmatpush.bf16.msra.mxu0 %v3766_v62  ;;  %v1333_v46 = vadd.f32 %v1332_v8, %v1319_v36  ;;  %v1360_v62 = vpop.f32.mrf.mxu3  ;;  %v4111_v8 = vld [vmem:[#allocation4 + $0x1f0] sm:$0xf0]  ;;  %v3986_v36 = vor.u32 %v4738_v27, %v3983_v28  ;;  %v4173_v27 = vld [vmem:[#allocation4 + $0x260] sm:$0xf]  ;;  %v4714_v28 = vld [vmem:[#allocation4 + $0x24] sm:$0xf] }
  0xca   :  { %1635 = vmatpush.bf16.msrb.mxu1 %v3366_v56  ;;  %v1331_v45 = vadd.f32 %v5097_v61, %v1317_v35  ;;  %v1400_v61 = vpop.f32.mrf.mxu2 }
  0xcb   :  { %1662 = vmatpush.bf16.msra.mxu2 %v3638_v51 }
  0xcc   :  { %1648 = vmatpush.bf16.msra.mxu3 %v3510_v49  ;;  %v4078_v49 = vor.u32 %v4764_v44, %v4077_v43  ;;  %v1345_v57 = vadd.f32 %v5104_v10, %v1331_v45  ;;  %v4752_v10 = vld [vmem:[#allocation4 + $0x14c] sm:$0xf0]  ;;  %v4766_v44 = vld [vmem:[#allocation4 + $0x1c4] sm:$0xf] }
  0xcd   :  { %1677 = vmatpush.bf16.msra.mxu0 %v3750_v15  ;;  %v1372_v51 = vpop.f32.mrf.mxu0 }
  0xce   :  { %1636 = vmatpush.bf16.msrb.mxu1 %v3350_v11  ;;  %v1386_v56 = vpop.f32.mrf.mxu1  ;;  %v1359_v2 = vadd.f32 %v1358_v33, %v1345_v57  ;;  %v4029_v11 = vld [vmem:[#allocation4 + $0x140] sm:$0xf] }
  0xcf   :  { %1663 = vmatpush.bf16.msra.mxu2 %v3622_v6  ;;  %v4046_v6 = vor.u32 %v4756_v0, %v4045_v63 }
  0xd0   :  { %1649 = vmatpush.bf16.msra.mxu3 %v3494_v5  ;;  %v4720_v5 = vld [vmem:[#allocation4 + $0x4c] sm:$0xf0]  ;;  %v1373_v12 = vadd.f32 %v1372_v51, %v1359_v2  ;;  %v3951_v51 = vld [vmem:[#allocation4 + $0xb0] sm:$0xf0] }
  0xd1   :  { %1637 = vmatmul.bf16.vlgmr.msrb.gmra.mxu1 %v5033_v54  ;;  %1678 = vmatpush.bf16.msra.mxu0 %v3734_v26  ;;  %v3950_v54 = vor.u32 %v4732_v39, %v3949_v38  ;;  %v3902_v15 = vor.u32 %v4720_v5, %v3901_v4  ;;  %v4712_v26 = vld [vmem:[#allocation4 + $0xc] sm:$0xf0]  ;;  %v4734_v39 = vld [vmem:[#allocation4 + $0xc4] sm:$0xf]  ;;  %v4063_v2 = vld [vmem:[#allocation4 + $0x190] sm:$0xf0] }
  0xd2   :  { %1692 = vmatpush.bf16.msra.mxu1 %v3862_v19  ;;  %v4030_v19 = vor.u32 %v4752_v10, %v4029_v11  ;;  %v1387_v22 = vadd.f32 %v1386_v56, %v1373_v12  ;;  %v3870_v33 = vor.u32 %v4712_v26, %v3869_v25  ;;  %v4762_v56 = vld [vmem:[#allocation4 + $0x1a4] sm:$0xf]  ;;  %v4205_v4 = vld [vmem:[#allocation4 + $0x2a0] sm:$0xf]  ;;  %v4796_v5 = vld [vmem:[#allocation4 + $0x2ac] sm:$0xf0] }
  0xd3   :  { %1664 = vmatpush.bf16.msra.mxu2 %v3606_v55  ;;  %v3886_v55 = vor.u32 %v4716_v18, %v3885_v17  ;;  %v4206_v10 = vor.u32 %v4796_v5, %v4205_v4  ;;  %v4754_v12 = vld [vmem:[#allocation4 + $0x164] sm:$0xf]  ;;  %v3903_v17 = vld [vmem:[#allocation4 + $0x50] sm:$0xf0] }
  0xd4   :  { %1650 = vmatpush.bf16.msra.mxu3 %v3478_v23  ;;  %1679 = vmatmul.bf16.vlgmr.msra.gmra.mxu0 %v5075_v42  ;;  %v4062_v42 = vor.u32 %v4760_v53, %v4061_v52  ;;  %v1402_v23 = vpop.f32.mrf.mxu2  ;;  %v1401_v31 = vadd.f32 %v1400_v61, %v1387_v22  ;;  %v4750_v22 = vld [vmem:[#allocation4 + $0x144] sm:$0xf] }
  0xd5   :  { %v1374_v7 = vpop.f32.mrf.mxu0 }
  0xd6   :  { %2503 = vmatpush.bf16.msrb.mxu1 %v4110_v29  ;;  %1665 = vmatmul.bf16.vlgmr.msra.gmra.mxu2 %v5073_v37  ;;  %v1347_v37 = vadd.f32 %v1346_v41, %v1333_v46  ;;  %v1388_v14 = vpop.f32.mrf.mxu1  ;;  %v3997_v29 = vld [vmem:[#allocation4 + $0x100] sm:$0xf]  ;;  %v5115_v35 = vpop.f32.mrf.mxu3  ;;  %v4114_v41 = vor.u32 %v4770_v32, %v4111_v8  ;;  %v1699_v43 = vmax.f32 %v1401_v31, 0.0  ;;  %v4746_v8 = vld [vmem:[#allocation4 + $0x124] sm:$0xf] }
  0xd7   :  { %1651 = vmatmul.bf16.vlgmr.msra.gmra.mxu3 %v5037_v60  ;;  %v3934_v60 = vor.u32 %v4728_v48, %v3933_v47  ;;  %v3998_v38 = vor.u32 %v4744_v30, %v3997_v29  ;;  %v4237_v47 = vld [vmem:[#allocation4 + $0x2e0] sm:$0xf]  ;;  %v4804_v48 = vld [vmem:[#allocation4 + $0x2ec] sm:$0xf0]  ;;  %v3887_v29 = vld [vmem:[#allocation4 + $0x30] sm:$0xf0] }
  0xd8   :  { %2489 = vmatpush.bf16.msrb.mxu3 %v3982_v24  ;;  %v1361_v3 = vadd.f32 %v1360_v62, %v1347_v37  ;;  %v4238_v53 = vor.u32 %v4804_v48, %v4237_v47  ;;  %v4221_v37 = vld [vmem:[#allocation4 + $0x2c0] sm:$0xf]  ;;  %v4741_v48 = vld [vmem:[#allocation4 + $0xf4] sm:$0xf0] }
  0xd9   :  { %v4222_v61 = vor.u32 %v4800_v58, %v4221_v37  ;;  %v4780_v37 = vld [vmem:[#allocation4 + $0x22c] sm:$0xf0] }
  0xda   :  { %2504 = vmatpush.bf16.msrb.mxu1 %v4094_v40  ;;  %v1375_v13 = vadd.f32 %v1374_v7, %v1361_v3  ;;  %v3967_v40 = vld [vmem:[#allocation4 + $0xd0] sm:$0xf0]  ;;  %2517 = vmatpush.bf16.msrb.mxu2 %v4238_v53 }
  0xdb   :  { %v3970_v46 = vor.u32 %v4734_v39, %v3967_v40  ;;  %v3919_v7 = vld [vmem:[#allocation4 + $0x70] sm:$0xf0]  ;;  %v4157_v39 = vld [vmem:[#allocation4 + $0x240] sm:$0xf]  ;;  %v4784_v40 = vld [vmem:[#allocation4 + $0x24c] sm:$0xf0] }
  0xdc   :  { %2490 = vmatpush.bf16.msrb.mxu3 %v3966_v34  ;;  %v1389_v16 = vadd.f32 %v1388_v14, %v1375_v13  ;;  %v1428_v63 = vpop.f32.mrf.mxu2  ;;  %v4047_v13 = vld [vmem:[#allocation4 + $0x170] sm:$0xf0] }
  0xdd   :  { %v4050_v18 = vor.u32 %v4754_v12, %v4047_v13  ;;  %v3957_v12 = vld [vmem:[#allocation4 + $0xa8] sm:$0xf]  ;;  %v4733_v13 = vld [vmem:[#allocation4 + $0xb4] sm:$0xf0] }
  0xde   :  { %2505 = vmatpush.bf16.msrb.mxu1 %v4078_v49  ;;  %v1403_v24 = vadd.f32 %v1402_v23, %v1389_v16  ;;  %v4730_v49 = vld [vmem:[#allocation4 + $0xa4] sm:$0xf]  ;;  %v1416_v0 = vpop.f32.mrf.mxu3  ;;  %2518 = vmatpush.bf16.msrb.mxu2 %v4222_v61  ;;  %v4031_v23 = vld [vmem:[#allocation4 + $0x150] sm:$0xf0]  ;;  %v3973_v61 = vld [vmem:[#allocation4 + $0xc8] sm:$0xf] }
  0xdf   :  { %v3954_v57 = vor.u32 %v4730_v49, %v3951_v51  ;;  %v4718_v16 = vld [vmem:[#allocation4 + $0x44] sm:$0xf]  ;;  %v4034_v30 = vor.u32 %v4750_v22, %v4031_v23  ;;  %v3999_v51 = vld [vmem:[#allocation4 + $0x110] sm:$0xf0] }
  0xe0   :  { %2491 = vmatpush.bf16.msrb.mxu3 %v3950_v54  ;;  %v1703_v34 = vmax.f32 %v1403_v24, 0.0  ;;  %v4095_v54 = vld [vmem:[#allocation4 + $0x1d0] sm:$0xf0]  ;;  %v281_v24 = vperm.slane %v5102_v9, 1  ;;  %v3906_v26 = vor.u32 %v4718_v16, %v3903_v17  ;;  %v4742_v49 = vld [vmem:[#allocation4 + $0x104] sm:$0xf] }
  0xe1   :  { %3866 = vmatmul.msk.bf16.vlgmr.msra.gmra.mxu1 %vm1303_vm0, %v5057_v50  ;;  %v4014_v50 = vor.u32 %v4748_v21, %v4013_v20  ;;  %v4098_v52 = vor.u32 %v4766_v44, %v4095_v54  ;;  %v3989_v44 = vld [vmem:[#allocation4 + $0xe8] sm:$0xf]  ;;  %v4223_v22 = vld [vmem:[#allocation4 + $0x2d0] sm:$0xf0] }
  0xe2   :  { %2506 = vmatpush.bf16.msrb.mxu1 %v4062_v42  ;;  %v5117_v45 = vpack.c.bf16 %v1703_v34, %v1699_v43  ;;  %v3935_v42 = vld [vmem:[#allocation4 + $0x90] sm:$0xf0]  ;;  %2519 = vmatpush.bf16.msrb.mxu2 %v4206_v10  ;;  %v1415_v34 = vadd.f32 %v5115_v35, %v281_v24 }
  0xe3   :  { %v3938_v3 = vor.u32 %v4726_v59, %v3935_v42  ;;  %v3871_v43 = vld [vmem:[#allocation4 + $0x10] sm:$0xf0]  ;;  %v3990_v59 = vor.u32 %v4741_v48, %v3989_v44  ;;  %v4002_v42 = vor.u32 %v4742_v49, %v3999_v51  ;;  %v3909_v44 = vld [vmem:[#allocation4 + $0x48] sm:$0xf]  ;;  %v4721_v48 = vld [vmem:[#allocation4 + $0x54] sm:$0xf0] }
  0xe4   :  { %2492 = vmatpush.bf16.msrb.mxu3 %v3934_v60  ;;  %v4079_v60 = vld [vmem:[#allocation4 + $0x1b0] sm:$0xf0]  ;;  %v1430_v25 = vpop.f32.mrf.mxu2  ;;  %v4790_v49 = vld [vmem:[#allocation4 + $0x284] sm:$0xf] }
  0xe5   :  { %v4082_v62 = vor.u32 %v4762_v56, %v4079_v60 }
  0xe6   :  { %2507 = vmatpush.bf16.msrb.mxu1 %v4046_v6  ;;  %v4722_v6 = vld [vmem:[#allocation4 + $0x64] sm:$0xf] }
  0xe7   :  { %v3922_v14 = vor.u32 %v4722_v6, %v3919_v7  ;;  %v4802_v7 = vld [vmem:[#allocation4 + $0x2e4] sm:$0xf] }
  0xe8   :  { %2493 = vmatpush.bf16.msrb.mxu3 %v3918_v1  ;;  %v4758_v1 = vld [vmem:[#allocation4 + $0x184] sm:$0xf] }
  0xe9   :  { %v4066_v11 = vor.u32 %v4758_v1, %v4063_v2 }
  0xea   :  { %2508 = vmatpush.bf16.msrb.mxu1 %v4030_v19  ;;  %v4792_v19 = vld [vmem:[#allocation4 + $0x28c] sm:$0xf0] }
  0xec   :  { %2494 = vmatpush.bf16.msrb.mxu3 %v3902_v15  ;;  %v4189_v15 = vld [vmem:[#allocation4 + $0x280] sm:$0xf] }
  0xed   :  { %v1442_v20 = vpop.f32.mrf.mxu0 }
  0xee   :  { %2509 = vmatpush.bf16.msrb.mxu1 %v4014_v50  ;;  %v4788_v50 = vld [vmem:[#allocation4 + $0x26c] sm:$0xf0]  ;;  %v1456_v32 = vpop.f32.mrf.mxu1 }
  0xef   :  { %v4174_v31 = vor.u32 %v4788_v50, %v4173_v27 }
  0xf0   :  { %2495 = vmatpush.bf16.msrb.mxu3 %v3886_v55  ;;  %v4190_v55 = vor.u32 %v4792_v19, %v4189_v15  ;;  %v3941_v19 = vld [vmem:[#allocation4 + $0x88] sm:$0xf] }
  0xf2   :  { %2510 = vmatpush.bf16.msrb.mxu1 %v3998_v38  ;;  %2520 = vmatpush.bf16.msrb.mxu2 %v4190_v55  ;;  %v3890_v38 = vor.u32 %v4714_v28, %v3887_v29  ;;  %v4729_v55 = vld [vmem:[#allocation4 + $0x94] sm:$0xf0] }
  0xf3   :  { %v3942_v29 = vor.u32 %v4729_v55, %v3941_v19  ;;  %v4820_v19 = vld [vmem:[#allocation4 + $0x36c] sm:$0xf0]  ;;  %v3991_v55 = vld [vmem:[#allocation4 + $0xf8] sm:$0xf0] }
  0xf4   :  { %2496 = vmatpush.bf16.msrb.mxu3 %v3870_v33  ;;  %v4015_v33 = vld [vmem:[#allocation4 + $0x130] sm:$0xf0] }
  0xf5   :  { %v4018_v54 = vor.u32 %v4746_v8, %v4015_v33  ;;  %v1444_v56 = vpop.f32.mrf.mxu0  ;;  %v4725_v33 = vld [vmem:[#allocation4 + $0x74] sm:$0xf0] }
  0xf6   :  { %2559 = vmatpush.bf16.msra.mxu1 %v4114_v41  ;;  %v5120_v21 = vpop.f32.mrf.mxu3  ;;  %2521 = vmatpush.bf16.msrb.mxu2 %v4174_v31  ;;  %v4710_v41 = vld [vmem:[#allocation4 + $0x4] sm:$0xf]  ;;  %v1458_v2 = vpop.f32.mrf.mxu1 }
  0xf7   :  { %2497 = vmatmul.bf16.vlgmr.msrb.gmra.mxu3 %v5117_v45  ;;  %v3874_v60 = vor.u32 %v4710_v41, %v3871_v43  ;;  %v4794_v31 = vld [vmem:[#allocation4 + $0x2a4] sm:$0xf]  ;;  %v4773_v41 = vld [vmem:[#allocation4 + $0x1f4] sm:$0xf0] }
  0xf8   :  { %2545 = vmatpush.bf16.msra.mxu3 %v3986_v36  ;;  %v1417_v36 = vadd.f32 %v1416_v0, %v281_v24  ;;  %v4737_v0 = vld [vmem:[#allocation4 + $0xd4] sm:$0xf0] }
  0xf9   :  { %v1484_v35 = vpop.f32.mrf.mxu2  ;;  %v3974_v5 = vor.u32 %v4737_v0, %v3973_v61  ;;  %v4175_v61 = vld [vmem:[#allocation4 + $0x270] sm:$0xf0] }
  0xfa   :  { %2560 = vmatpush.bf16.msra.mxu1 %v4098_v52  ;;  %v1429_v52 = vadd.f32 %v1428_v63, %v1415_v34  ;;  %v1431_v53 = vadd.f32 %v1430_v25, %v1417_v36  ;;  %v4125_v63 = vld [vmem:[#allocation4 + $0x200] sm:$0xf] }
  0xfb   :  { %v4365_v25 = vld [vmem:[#allocation4 + $0x3e0] sm:$0xf] }
  0xfc   :  { %2546 = vmatpush.bf16.msra.mxu3 %v3970_v46  ;;  %v4158_v46 = vor.u32 %v4784_v40, %v4157_v39  ;;  %v1443_v58 = vadd.f32 %v1442_v20, %v1429_v52  ;;  %v1445_v1 = vadd.f32 %v1444_v56, %v1431_v53  ;;  %v4798_v20 = vld [vmem:[#allocation4 + $0x2c4] sm:$0xf]  ;;  %v4349_v36 = vld [vmem:[#allocation4 + $0x3c0] sm:$0xf]  ;;  %v4117_v40 = vld [vmem:[#allocation4 + $0x1e8] sm:$0xf] }
  0xfd   :  { %v4226_v24 = vor.u32 %v4798_v20, %v4223_v22  ;;  %v4118_v51 = vor.u32 %v4773_v41, %v4117_v40  ;;  %v4191_v52 = vld [vmem:[#allocation4 + $0x290] sm:$0xf0]  ;;  %v4333_v53 = vld [vmem:[#allocation4 + $0x3a0] sm:$0xf]  ;;  %v4828_v56 = vld [vmem:[#allocation4 + $0x3ac] sm:$0xf0] }
  0xfe   :  { %2561 = vmatpush.bf16.msra.mxu1 %v4082_v62  ;;  %v1472_v47 = vpop.f32.mrf.mxu3  ;;  %2522 = vmatpush.bf16.msrb.mxu2 %v4158_v46  ;;  %v1457_v4 = vadd.f32 %v1456_v32, %v1443_v58  ;;  %v1459_v16 = vadd.f32 %v1458_v2, %v1445_v1  ;;  %v4207_v32 = vld [vmem:[#allocation4 + $0x2b0] sm:$0xf0]  ;;  %v4334_v58 = vor.u32 %v4828_v56, %v4333_v53  ;;  %v4717_v1 = vld [vmem:[#allocation4 + $0x34] sm:$0xf0]  ;;  %v282_v53 = vperm.slane %v5102_v9, 2 }
  0xff   :  { %v4210_v34 = vor.u32 %v4794_v31, %v4207_v32  ;;  %v4761_v22 = vld [vmem:[#allocation4 + $0x194] sm:$0xf0]  ;;  %v4735_v32 = vld [vmem:[#allocation4 + $0xcc] sm:$0xf] }
 0x100   :  { %2547 = vmatpush.bf16.msra.mxu3 %v3954_v57  ;;  %v4141_v57 = vld [vmem:[#allocation4 + $0x220] sm:$0xf]  ;;  %v1471_v15 = vadd.f32 %v5120_v21, %v1457_v4  ;;  %v1473_v17 = vadd.f32 %v1472_v47, %v1459_v16  ;;  %v4085_v4 = vld [vmem:[#allocation4 + $0x1a8] sm:$0xf]  ;;  %v4757_v31 = vld [vmem:[#allocation4 + $0x174] sm:$0xf0] }
 0x101   :  { %v4142_v62 = vor.u32 %v4780_v37, %v4141_v57  ;;  %v1486_v23 = vpop.f32.mrf.mxu2  ;;  %v4769_v57 = vld [vmem:[#allocation4 + $0x1d4] sm:$0xf0]  ;;  %v4194_v37 = vor.u32 %v4790_v49, %v4191_v52  ;;  %v4069_v16 = vld [vmem:[#allocation4 + $0x188] sm:$0xf]  ;;  %v3959_v49 = vld [vmem:[#allocation4 + $0xb8] sm:$0xf0] }
 0x102   :  { %2562 = vmatpush.bf16.msra.mxu1 %v4066_v11  ;;  %v4239_v11 = vld [vmem:[#allocation4 + $0x2f0] sm:$0xf0]  ;;  %v1485_v27 = vadd.f32 %v1484_v35, %v1471_v15  ;;  %v1487_v28 = vadd.f32 %v1486_v23, %v1473_v17  ;;  %v4739_v23 = vld [vmem:[#allocation4 + $0xec] sm:$0xf] }
 0x103   :  { %2523 = vmatpush.bf16.msrb.mxu2 %v4142_v62  ;;  %v4786_v62 = vld [vmem:[#allocation4 + $0x264] sm:$0xf] }
 0x104   :  { %2548 = vmatpush.bf16.msra.mxu3 %v3938_v3  ;;  %v4776_v3 = vld [vmem:[#allocation4 + $0x20c] sm:$0xf0]  ;;  %v4178_v2 = vor.u32 %v4786_v62, %v4175_v61  ;;  %v3943_v61 = vld [vmem:[#allocation4 + $0x98] sm:$0xf0] }
 0x105   :  { %v4126_v6 = vor.u32 %v4776_v3, %v4125_v63  ;;  %v4317_v63 = vld [vmem:[#allocation4 + $0x380] sm:$0xf]  ;;  %v4824_v3 = vld [vmem:[#allocation4 + $0x38c] sm:$0xf0] }
 0x106   :  { %2563 = vmatpush.bf16.msra.mxu1 %v4050_v18  ;;  %v1498_v10 = vpop.f32.mrf.mxu3  ;;  %v3958_v18 = vor.u32 %v4733_v13, %v3957_v12  ;;  %v4713_v12 = vld [vmem:[#allocation4 + $0x14] sm:$0xf0]  ;;  %v4782_v13 = vld [vmem:[#allocation4 + $0x244] sm:$0xf]  ;;  %v4808_v62 = vld [vmem:[#allocation4 + $0x30c] sm:$0xf0] }
 0x107   :  { %2524 = vmatpush.bf16.msrb.mxu2 %v4126_v6  ;;  %v1499_v21 = vadd.f32 %v1498_v10, %v1485_v27  ;;  %v4318_v6 = vor.u32 %v4824_v3, %v4317_v63  ;;  %v4143_v27 = vld [vmem:[#allocation4 + $0x230] sm:$0xf0] }
 0x108   :  { %2549 = vmatpush.bf16.msra.mxu3 %v3922_v14  ;;  %v4242_v14 = vor.u32 %v4802_v7, %v4239_v11  ;;  %v3877_v11 = vld [vmem:[#allocation4 + $0x8] sm:$0xf] }
 0x10a   :  { %2564 = vmatpush.bf16.msra.mxu1 %v4034_v30  ;;  %v3925_v30 = vld [vmem:[#allocation4 + $0x68] sm:$0xf] }
 0x10b   :  { %2573 = vmatpush.bf16.msra.mxu2 %v4242_v14  ;;  %v3926_v47 = vor.u32 %v4725_v33, %v3925_v30  ;;  %v4159_v14 = vld [vmem:[#allocation4 + $0x250] sm:$0xf0]  ;;  %v4816_v30 = vld [vmem:[#allocation4 + $0x34c] sm:$0xf0] }
 0x10c   :  { %2550 = vmatpush.bf16.msra.mxu3 %v3906_v26  ;;  %v4836_v26 = vld [vmem:[#allocation4 + $0x3ec] sm:$0xf0]  ;;  %v4162_v17 = vor.u32 %v4782_v13, %v4159_v14 }
 0x10d   :  { %v4366_v50 = vor.u32 %v4836_v26, %v4365_v25  ;;  %v5129_v7 = vpop.f32.mrf.mxu0  ;;  %v3878_v25 = vor.u32 %v4713_v12, %v3877_v11  ;;  %v4778_v26 = vld [vmem:[#allocation4 + $0x224] sm:$0xf]  ;;  %v4005_v11 = vld [vmem:[#allocation4 + $0x108] sm:$0xf]  ;;  %v4723_v12 = vld [vmem:[#allocation4 + $0x6c] sm:$0xf] }
 0x10e   :  { %2565 = vmatpush.bf16.msra.mxu1 %v4018_v54  ;;  %v1500_v8 = vpop.f32.mrf.mxu3  ;;  %v1700_v54 = vmax.f32 %v1499_v21, 0.0  ;;  %v1512_v20 = vpop.f32.mrf.mxu1  ;;  %v4053_v21 = vld [vmem:[#allocation4 + $0x168] sm:$0xf]  ;;  %v4146_v33 = vor.u32 %v4778_v26, %v4143_v27  ;;  %v4719_v26 = vld [vmem:[#allocation4 + $0x4c] sm:$0xf] }
 0x10f   :  { %2574 = vmatpush.bf16.msra.mxu2 %v4226_v24  ;;  %2531 = vmatpush.bf16.msrb.mxu0 %v4366_v50  ;;  %v1501_v39 = vadd.f32 %v1500_v8, %v1487_v28  ;;  %v4070_v50 = vor.u32 %v4761_v22, %v4069_v16  ;;  %v3994_v28 = vor.u32 %v4739_v23, %v3991_v55  ;;  %v3975_v8 = vld [vmem:[#allocation4 + $0xd8] sm:$0xf0]  ;;  %v4830_v16 = vld [vmem:[#allocation4 + $0x3c4] sm:$0xf]  ;;  %v4771_v22 = vld [vmem:[#allocation4 + $0x1ec] sm:$0xf] }
 0x110   :  { %2551 = vmatpush.bf16.msra.mxu3 %v3890_v38  ;;  %v4832_v38 = vld [vmem:[#allocation4 + $0x3cc] sm:$0xf0]  ;;  %v4054_v41 = vor.u32 %v4757_v31, %v4053_v21  ;;  %v1513_v63 = vadd.f32 %v1512_v20, %v282_v53  ;;  %v4119_v20 = vld [vmem:[#allocation4 + $0x1f8] sm:$0xf0]  ;;  %v4335_v21 = vld [vmem:[#allocation4 + $0x3b0] sm:$0xf0] }
 0x111   :  { %v4350_v43 = vor.u32 %v4832_v38, %v4349_v36  ;;  %v1704_v46 = vmax.f32 %v1501_v39, 0.0  ;;  %v4774_v38 = vld [vmem:[#allocation4 + $0x204] sm:$0xf]  ;;  %v4127_v39 = vld [vmem:[#allocation4 + $0x210] sm:$0xf0]  ;;  %v4122_v27 = vor.u32 %v4771_v22, %v4119_v20 }
 0x112   :  { %2566 = vmatpush.bf16.msra.mxu1 %v4002_v42  ;;  %v3893_v42 = vld [vmem:[#allocation4 + $0x28] sm:$0xf]  ;;  %v4767_v31 = vld [vmem:[#allocation4 + $0x1cc] sm:$0xf]  ;;  %v4810_v22 = vld [vmem:[#allocation4 + $0x324] sm:$0xf] }
 0x113   :  { %2575 = vmatpush.bf16.msra.mxu2 %v4210_v34  ;;  %2532 = vmatpush.bf16.msrb.mxu0 %v4350_v43  ;;  %v5126_v35 = vpack.c.bf16 %v1704_v46, %v1700_v54  ;;  %v3894_v10 = vor.u32 %v4717_v1, %v3893_v42  ;;  %v3978_v43 = vor.u32 %v4735_v32, %v3975_v8  ;;  %v4269_v54 = vld [vmem:[#allocation4 + $0x320] sm:$0xf]  ;;  %v4812_v46 = vld [vmem:[#allocation4 + $0x32c] sm:$0xf0]  ;;  %v4834_v1 = vld [vmem:[#allocation4 + $0x3e4] sm:$0xf] }
 0x114   :  { %2552 = vmatpush.bf16.msra.mxu3 %v3874_v60  ;;  %v4101_v60 = vld [vmem:[#allocation4 + $0x1c8] sm:$0xf]  ;;  %v4270_v52 = vor.u32 %v4812_v46, %v4269_v54  ;;  %v4253_v42 = vld [vmem:[#allocation4 + $0x300] sm:$0xf]  ;;  %v4103_v32 = vld [vmem:[#allocation4 + $0x1d8] sm:$0xf0] }
 0x115   :  { %2511 = vmatmul.bf16.vlgmr.msrb.gmra.mxu1 %v5126_v35  ;;  %v4102_v0 = vor.u32 %v4769_v57, %v4101_v60  ;;  %v5131_v40 = vpop.f32.mrf.mxu0  ;;  %v4021_v60 = vld [vmem:[#allocation4 + $0x128] sm:$0xf]  ;;  %v4749_v57 = vld [vmem:[#allocation4 + $0x134] sm:$0xf0]  ;;  %v4271_v20 = vld [vmem:[#allocation4 + $0x330] sm:$0xf0] }
 0x116   :  { %2615 = vmatpush.bf16.msrb.mxu1 %v4118_v51  ;;  %v4130_v51 = vor.u32 %v4774_v38, %v4127_v39  ;;  %v1514_v56 = vpop.f32.mrf.mxu1  ;;  %v4106_v38 = vor.u32 %v4767_v31, %v4103_v32  ;;  %v3895_v39 = vld [vmem:[#allocation4 + $0x38] sm:$0xf0]  ;;  %v283_v31 = vperm.slane %v5102_v9, 3  ;;  %v4747_v32 = vld [vmem:[#allocation4 + $0x12c] sm:$0xf] }
 0x117   :  { %2553 = vmatmul.bf16.vlgmr.msra.gmra.mxu3 %v5117_v45  ;;  %2576 = vmatpush.bf16.msra.mxu2 %v4194_v37 }
 0x118   :  { %2601 = vmatpush.bf16.msrb.mxu3 %v3990_v59  ;;  %v3910_v59 = vor.u32 %v4721_v48, %v3909_v44  ;;  %2533 = vmatpush.bf16.msrb.mxu0 %v4334_v58  ;;  %v4037_v44 = vld [vmem:[#allocation4 + $0x148] sm:$0xf]  ;;  %v4731_v48 = vld [vmem:[#allocation4 + $0xac] sm:$0xf] }
 0x119   :  { %v3962_v58 = vor.u32 %v4731_v48, %v3959_v49  ;;  %v1554_v13 = vpop.f32.mrf.mxu2 }
 0x11a   :  { %2616 = vmatpush.bf16.msrb.mxu1 %v4102_v0  ;;  %v1526_v36 = vpop.f32.mrf.mxu3  ;;  %v4254_v0 = vor.u32 %v4808_v62, %v4253_v42  ;;  %v4759_v42 = vld [vmem:[#allocation4 + $0x18c] sm:$0xf]  ;;  %v4071_v62 = vld [vmem:[#allocation4 + $0x198] sm:$0xf0] }
 0x11b   :  { %2577 = vmatpush.bf16.msra.mxu2 %v4178_v2  ;;  %v4367_v2 = vld [vmem:[#allocation4 + $0x3f0] sm:$0xf0] }
 0x11c   :  { %2602 = vmatpush.bf16.msrb.mxu3 %v3974_v5  ;;  %v4765_v5 = vld [vmem:[#allocation4 + $0x1b4] sm:$0xf0]  ;;  %2534 = vmatpush.bf16.msrb.mxu0 %v4318_v6  ;;  %v4370_v3 = vor.u32 %v4834_v1, %v4367_v2 }
 0x11d   :  { %v4086_v15 = vor.u32 %v4765_v5, %v4085_v4  ;;  %v5136_v4 = vpop.f32.mrf.mxu0  ;;  %v4022_v5 = vor.u32 %v4749_v57, %v4021_v60  ;;  %v3879_v57 = vld [vmem:[#allocation4 + $0x18] sm:$0xf0] }
 0x11f   :  { %2617 = vmatpush.bf16.msrb.mxu1 %v4086_v15  ;;  %2578 = vmatpush.bf16.msra.mxu2 %v4162_v17  ;;  %v3927_v15 = vld [vmem:[#allocation4 + $0x78] sm:$0xf0]  ;;  %v4351_v17 = vld [vmem:[#allocation4 + $0x3d0] sm:$0xf0] }
 0x120   :  { %2603 = vmatpush.bf16.msrb.mxu3 %v3958_v18  ;;  %v4301_v18 = vld [vmem:[#allocation4 + $0x360] sm:$0xf]  ;;  %v4354_v23 = vor.u32 %v4830_v16, %v4351_v17  ;;  %v4245_v16 = vld [vmem:[#allocation4 + $0x2e8] sm:$0xf]  ;;  %v4805_v17 = vld [vmem:[#allocation4 + $0x2f4] sm:$0xf0] }
 0x121   :  { %v4302_v24 = vor.u32 %v4820_v19, %v4301_v18  ;;  %v1527_v18 = vadd.f32 %v1526_v36, %v1513_v63  ;;  %v1515_v19 = vadd.f32 %v1514_v56, %v282_v53  ;;  %v1556_v49 = vpop.f32.mrf.mxu2  ;;  %v4711_v53 = vld [vmem:[#allocation4 + $0xc] sm:$0xf]  ;;  %v4074_v63 = vor.u32 %v4759_v42, %v4071_v62  ;;  %v4165_v62 = vld [vmem:[#allocation4 + $0x248] sm:$0xf] }
 0x122   :  { %v1528_v14 = vpop.f32.mrf.mxu3  ;;  %v3882_v1 = vor.u32 %v4711_v53, %v3879_v57  ;;  %v4789_v53 = vld [vmem:[#allocation4 + $0x274] sm:$0xf0] }
 0x123   :  { %2535 = vmatpush.bf16.msrb.mxu0 %v4302_v24  ;;  %2618 = vmatpush.bf16.msrb.mxu1 %v4070_v50  ;;  %v3911_v50 = vld [vmem:[#allocation4 + $0x58] sm:$0xf0] }
 0x124   :  { %2604 = vmatpush.bf16.msrb.mxu3 %v3942_v29  ;;  %v4285_v29 = vld [vmem:[#allocation4 + $0x340] sm:$0xf]  ;;  %2579 = vmatpush.bf16.msra.mxu2 %v4146_v33  ;;  %v3914_v33 = vor.u32 %v4719_v26, %v3911_v50  ;;  %v4246_v26 = vor.u32 %v4805_v17, %v4245_v16  ;;  %v4229_v50 = vld [vmem:[#allocation4 + $0x2c8] sm:$0xf]  ;;  %v4803_v17 = vld [vmem:[#allocation4 + $0x2ec] sm:$0xf] }
 0x125   :  { %v4286_v34 = vor.u32 %v4816_v30, %v4285_v29  ;;  %2567 = vmatmul.bf16.vlgmr.msra.gmra.mxu1 %v5126_v35  ;;  %v1541_v29 = vadd.f32 %v5129_v7, %v1527_v18  ;;  %v1529_v30 = vadd.f32 %v1528_v14, %v1515_v19  ;;  %v1598_v46 = vpop.f32.mrf.mxu0  ;;  %v4763_v7 = vld [vmem:[#allocation4 + $0x1ac] sm:$0xf] }
 0x127   :  { %2536 = vmatpush.bf16.msrb.mxu0 %v4286_v34  ;;  %2619 = vmatpush.bf16.msrb.mxu1 %v4054_v41  ;;  %v4715_v34 = vld [vmem:[#allocation4 + $0x2c] sm:$0xf]  ;;  %v4822_v41 = vld [vmem:[#allocation4 + $0x384] sm:$0xf]  ;;  %v1543_v54 = vadd.f32 %v5131_v40, %v1529_v30  ;;  %v4255_v30 = vld [vmem:[#allocation4 + $0x310] sm:$0xf0] }
 0x128   :  { %2605 = vmatpush.bf16.msrb.mxu3 %v3926_v47  ;;  %v4753_v47 = vld [vmem:[#allocation4 + $0x154] sm:$0xf0]  ;;  %2580 = vmatpush.bf16.msra.mxu2 %v4130_v51 }
 0x129   :  { %v4038_v37 = vor.u32 %v4753_v47, %v4037_v44  ;;  %v1555_v44 = vadd.f32 %v1554_v13, %v1541_v29  ;;  %v4087_v47 = vld [vmem:[#allocation4 + $0x1b8] sm:$0xf0]  ;;  %v4806_v29 = vld [vmem:[#allocation4 + $0x304] sm:$0xf] }
 0x12a   :  { %v4090_v60 = vor.u32 %v4763_v7, %v4087_v47  ;;  %v4197_v7 = vld [vmem:[#allocation4 + $0x288] sm:$0xf]  ;;  %v4793_v47 = vld [vmem:[#allocation4 + $0x294] sm:$0xf0] }
 0x12b   :  { %2537 = vmatpush.bf16.msrb.mxu0 %v4270_v52  ;;  %2620 = vmatpush.bf16.msrb.mxu1 %v4038_v37  ;;  %v3898_v52 = vor.u32 %v4715_v34, %v3895_v39  ;;  %v4818_v37 = vld [vmem:[#allocation4 + $0x364] sm:$0xf] }
 0x12c   :  { %2606 = vmatpush.bf16.msrb.mxu3 %v3910_v59  ;;  %v4727_v59 = vld [vmem:[#allocation4 + $0x8c] sm:$0xf] }
 0x12d   :  { %v3946_v6 = vor.u32 %v4727_v59, %v3943_v61  ;;  %v1557_v59 = vadd.f32 %v1556_v49, %v1543_v54  ;;  %v4007_v54 = vld [vmem:[#allocation4 + $0x118] sm:$0xf0] }
 0x12e   :  { %v1568_v55 = vpop.f32.mrf.mxu1 }
 0x12f   :  { %2538 = vmatpush.bf16.msrb.mxu0 %v4254_v0  ;;  %2621 = vmatpush.bf16.msrb.mxu1 %v4022_v5  ;;  %v1569_v51 = vadd.f32 %v1568_v55, %v1555_v44  ;;  %v4287_v5 = vld [vmem:[#allocation4 + $0x350] sm:$0xf0]  ;;  %v4743_v44 = vld [vmem:[#allocation4 + $0x10c] sm:$0xf] }
 0x130   :  { %2607 = vmatpush.bf16.msrb.mxu3 %v3894_v10  ;;  %v4745_v10 = vld [vmem:[#allocation4 + $0x114] sm:$0xf0] }
 0x131   :  { %v4006_v24 = vor.u32 %v4745_v10, %v4005_v11  ;;  %v4755_v10 = vld [vmem:[#allocation4 + $0x16c] sm:$0xf] }
 0x133   :  { %2587 = vmatpush.bf16.msra.mxu0 %v4370_v3  ;;  %2622 = vmatpush.bf16.msrb.mxu1 %v4006_v24  ;;  %v4814_v3 = vld [vmem:[#allocation4 + $0x344] sm:$0xf]  ;;  %v4751_v24 = vld [vmem:[#allocation4 + $0x14c] sm:$0xf] }
 0x134   :  { %2608 = vmatpush.bf16.msrb.mxu3 %v3878_v25  ;;  %v3930_v25 = vor.u32 %v4723_v12, %v3927_v15  ;;  %v4055_v12 = vld [vmem:[#allocation4 + $0x178] sm:$0xf0]  ;;  %v4290_v13 = vor.u32 %v4814_v3, %v4287_v5  ;;  %v1624_v15 = vpop.f32.mrf.mxu0  ;;  %v4781_v3 = vld [vmem:[#allocation4 + $0x234] sm:$0xf0] }
 0x135   :  { %v4058_v19 = vor.u32 %v4755_v10, %v4055_v12 }
 0x136   :  { %2623 = vmatmul.bf16.vlgmr.msrb.gmra.mxu1 %v5126_v35  ;;  %v1570_v56 = vpop.f32.mrf.mxu1 }
 0x137   :  { %2609 = vmatmul.bf16.vlgmr.msrb.gmra.mxu3 %v5117_v45  ;;  %2588 = vmatpush.bf16.msra.mxu0 %v4354_v23  ;;  %v1571_v0 = vadd.f32 %v1570_v56, %v1557_v59 }
 0x138   :  { %2657 = vmatpush.bf16.msra.mxu3 %v3994_v28  ;;  %v4826_v28 = vld [vmem:[#allocation4 + $0x3a4] sm:$0xf]  ;;  %2671 = vmatpush.bf16.msra.mxu1 %v4122_v27 }
 0x139   :  { %v4338_v8 = vor.u32 %v4826_v28, %v4335_v21  ;;  %v1610_v18 = vpop.f32.mrf.mxu2  ;;  %v4801_v28 = vld [vmem:[#allocation4 + $0x2d4] sm:$0xf0] }
 0x13a   :  { %v1582_v36 = vpop.f32.mrf.mxu3  ;;  %v4230_v34 = vor.u32 %v4801_v28, %v4229_v50  ;;  %v4373_v50 = vld [vmem:[#allocation4 + $0x3e8] sm:$0xf]  ;;  %v4837_v28 = vld [vmem:[#allocation4 + $0x3f4] sm:$0xf0] }
 0x13b   :  { %2589 = vmatpush.bf16.msra.mxu0 %v4338_v8  ;;  %v1583_v40 = vadd.f32 %v1582_v36, %v1569_v51  ;;  %v4023_v8 = vld [vmem:[#allocation4 + $0x138] sm:$0xf0]  ;;  %v4797_v36 = vld [vmem:[#allocation4 + $0x2b4] sm:$0xf0]  ;;  %v4198_v51 = vor.u32 %v4793_v47, %v4197_v7  ;;  %v4325_v47 = vld [vmem:[#allocation4 + $0x388] sm:$0xf] }
 0x13c   :  { %2658 = vmatpush.bf16.msra.mxu3 %v3978_v43  ;;  %v4319_v43 = vld [vmem:[#allocation4 + $0x390] sm:$0xf0]  ;;  %2672 = vmatpush.bf16.msra.mxu1 %v4106_v38  ;;  %v4026_v39 = vor.u32 %v4747_v32, %v4023_v8  ;;  %v4795_v32 = vld [vmem:[#allocation4 + $0x2ac] sm:$0xf]  ;;  %v4215_v8 = vld [vmem:[#allocation4 + $0x2b8] sm:$0xf0] }
 0x13d   :  { %v4322_v48 = vor.u32 %v4822_v41, %v4319_v43  ;;  %v1611_v41 = vadd.f32 %v1610_v18, %v283_v31  ;;  %v1626_v43 = vpop.f32.mrf.mxu0  ;;  %v4247_v18 = vld [vmem:[#allocation4 + $0x2f8] sm:$0xf0] }
 0x13e   :  { %v4183_v7 = vld [vmem:[#allocation4 + $0x278] sm:$0xf0] }
 0x13f   :  { %2590 = vmatpush.bf16.msra.mxu0 %v4322_v48  ;;  %v4010_v48 = vor.u32 %v4743_v44, %v4007_v54  ;;  %v1625_v49 = vadd.f32 %v1624_v15, %v1611_v41  ;;  %v4133_v15 = vld [vmem:[#allocation4 + $0x208] sm:$0xf]  ;;  %v4199_v41 = vld [vmem:[#allocation4 + $0x298] sm:$0xf0]  ;;  %v4829_v44 = vld [vmem:[#allocation4 + $0x3b4] sm:$0xf0] }
 0x140   :  { %2659 = vmatpush.bf16.msra.mxu3 %v3962_v58  ;;  %v4303_v58 = vld [vmem:[#allocation4 + $0x370] sm:$0xf0]  ;;  %2673 = vmatpush.bf16.msra.mxu1 %v4090_v60 }
 0x141   :  { %v4306_v61 = vor.u32 %v4818_v37, %v4303_v58 }
 0x142   :  { %v1584_v2 = vpop.f32.mrf.mxu3 }
 0x143   :  { %v1585_v11 = vadd.f32 %v1584_v2, %v1571_v0  ;;  %2591 = vmatpush.bf16.msra.mxu0 %v4306_v61  ;;  %v4785_v61 = vld [vmem:[#allocation4 + $0x254] sm:$0xf0] }
 0x144   :  { %2660 = vmatpush.bf16.msra.mxu3 %v3946_v6  ;;  %v1597_v6 = vadd.f32 %v5136_v4, %v1583_v40  ;;  %2674 = vmatpush.bf16.msra.mxu1 %v4074_v63  ;;  %v4274_v4 = vor.u32 %v4810_v22, %v4271_v20  ;;  %v4149_v63 = vld [vmem:[#allocation4 + $0x228] sm:$0xf] }
 0x145   :  { %v1599_v14 = vadd.f32 %v1598_v46, %v1585_v11  ;;  %v1612_v46 = vpop.f32.mrf.mxu2  ;;  %v4150_v12 = vor.u32 %v4781_v3, %v4149_v63  ;;  %v4813_v63 = vld [vmem:[#allocation4 + $0x334] sm:$0xf0] }
 0x146   :  { %v1701_v23 = vmax.f32 %v1597_v6, 0.0  ;;  %v1613_v37 = vadd.f32 %v1612_v46, %v283_v31  ;;  %v4374_v31 = vor.u32 %v4837_v28, %v4373_v50  ;;  %v4811_v50 = vld [vmem:[#allocation4 + $0x32c] sm:$0xf]  ;;  %v4279_v28 = vld [vmem:[#allocation4 + $0x338] sm:$0xf0] }
 0x147   :  { %v1705_v55 = vmax.f32 %v1599_v14, 0.0  ;;  %2592 = vmatpush.bf16.msra.mxu0 %v4290_v13 }
 0x148   :  { %2661 = vmatpush.bf16.msra.mxu3 %v3930_v25  ;;  %v4039_v25 = vld [vmem:[#allocation4 + $0x158] sm:$0xf0]  ;;  %2675 = vmatpush.bf16.msra.mxu1 %v4058_v19  ;;  %v1627_v0 = vadd.f32 %v1626_v43, %v1613_v37  ;;  %v4341_v43 = vld [vmem:[#allocation4 + $0x3a8] sm:$0xf] }
 0x149   :  { %v5143_v27 = vpack.c.bf16 %v1705_v55, %v1701_v23  ;;  %v4042_v21 = vor.u32 %v4751_v24, %v4039_v25  ;;  %v4250_v55 = vor.u32 %v4803_v17, %v4247_v18  ;;  %v4799_v25 = vld [vmem:[#allocation4 + $0x2cc] sm:$0xf]  ;;  %v4342_v46 = vor.u32 %v4829_v44, %v4341_v43  ;;  %v4343_v18 = vld [vmem:[#allocation4 + $0x3b8] sm:$0xf0] }
 0x14a   :  { %v4827_v17 = vld [vmem:[#allocation4 + $0x3ac] sm:$0xf] }
 0x14b   :  { %2525 = vmatmul.bf16.vlgmr.msrb.gmra.mxu2 %v5143_v27  ;;  %2593 = vmatpush.bf16.msra.mxu0 %v4274_v4  ;;  %v4231_v4 = vld [vmem:[#allocation4 + $0x2d8] sm:$0xf0]  ;;  %v4839_v43 = vld [vmem:[#allocation6 + $0x8] sm:$0xff] }
 0x14c   :  { %2662 = vmatpush.bf16.msra.mxu3 %v3914_v33  ;;  %v4258_v33 = vor.u32 %v4806_v29, %v4255_v30  ;;  %2629 = vmatpush.bf16.msrb.mxu2 %v4246_v26  ;;  %v4234_v30 = vor.u32 %v4799_v25, %v4231_v4  ;;  %v4295_v4 = vld [vmem:[#allocation4 + $0x358] sm:$0xf0]  ;;  %v4851_v44 = vld [vmem:[#allocation6 + $0x68] sm:$0xff] }
 0x14d   :  { %2676 = vmatpush.bf16.msra.mxu1 %v4042_v21 }
 0x14e   :  { %v1638_v38 = vpop.f32.mrf.mxu1 }
 0x14f   :  { %2594 = vmatpush.bf16.msra.mxu0 %v4258_v33  ;;  %v1639_v60 = vadd.f32 %v1638_v38, %v1625_v49 }
 0x150   :  { %2663 = vmatpush.bf16.msra.mxu3 %v3898_v52  ;;  %2630 = vmatpush.bf16.msrb.mxu2 %v4230_v34  ;;  %v4181_v52 = vld [vmem:[#allocation4 + $0x268] sm:$0xf] }
 0x151   :  { %2677 = vmatpush.bf16.msra.mxu1 %v4026_v39  ;;  %v4182_v59 = vor.u32 %v4789_v53, %v4181_v52  ;;  %v1680_v40 = vpop.f32.mrf.mxu0  ;;  %v4357_v34 = vld [vmem:[#allocation4 + $0x3c8] sm:$0xf]  ;;  %v4791_v39 = vld [vmem:[#allocation4 + $0x28c] sm:$0xf]  ;;  %v4167_v53 = vld [vmem:[#allocation4 + $0x258] sm:$0xf0] }
 0x152   :  { %v4202_v54 = vor.u32 %v4791_v39, %v4199_v41  ;;  %v4783_v52 = vld [vmem:[#allocation4 + $0x24c] sm:$0xf]  ;;  %v4840_v39 = vld [vmem:[#allocation6 + $0x10] sm:$0xff] }
 0x153   :  { %v4852_v41 = vld [vmem:[#allocation6 + $0x70] sm:$0xff] }
 0x154   :  { %2664 = vmatpush.bf16.msra.mxu3 %v3882_v1  ;;  %v4166_v1 = vor.u32 %v4785_v61, %v4165_v62 }
 0x155   :  { %2678 = vmatpush.bf16.msra.mxu1 %v4010_v48  ;;  %v4825_v48 = vld [vmem:[#allocation4 + $0x394] sm:$0xf0] }
 0x156   :  { %v1640_v56 = vpop.f32.mrf.mxu1 }
 0x157   :  { %2665 = vmatmul.bf16.vlgmr.msra.gmra.mxu3 %v5117_v45  ;;  %v4213_v45 = vld [vmem:[#allocation4 + $0x2a8] sm:$0xf]  ;;  %v1641_v5 = vadd.f32 %v1640_v56, %v1627_v0  ;;  %v4775_v0 = vld [vmem:[#allocation4 + $0x20c] sm:$0xf] }
 0x158   :  { %v4214_v9 = vor.u32 %v4797_v36, %v4213_v45  ;;  %2679 = vmatmul.bf16.vlgmr.msra.gmra.mxu1 %v5126_v35  ;;  %v4777_v35 = vld [vmem:[#allocation4 + $0x214] sm:$0xf0]  ;;  %v4218_v36 = vor.u32 %v4795_v32, %v4215_v8  ;;  %v4309_v56 = vld [vmem:[#allocation4 + $0x368] sm:$0xf]  ;;  %v4844_v8 = vld [vmem:[#allocation6 + $0x30] sm:$0xff] }
 0x159   :  { %v1666_v58 = vpop.f32.mrf.mxu2  ;;  %v1682_v19 = vpop.f32.mrf.mxu0  ;;  %v4134_v20 = vor.u32 %v4777_v35, %v4133_v15  ;;  %v4833_v45 = vld [vmem:[#allocation4 + $0x3d4] sm:$0xf0]  ;;  %v4831_v15 = vld [vmem:[#allocation4 + $0x3cc] sm:$0xf]  ;;  %v4359_v35 = vld [vmem:[#allocation4 + $0x3d8] sm:$0xf0] }
 0x15a   :  { %2631 = vmatpush.bf16.msrb.mxu2 %v4214_v9  ;;  %v1652_v57 = vpop.f32.mrf.mxu3  ;;  %v4358_v38 = vor.u32 %v4833_v45, %v4357_v34  ;;  %v4787_v9 = vld [vmem:[#allocation4 + $0x26c] sm:$0xf]  ;;  %v4845_v32 = vld [vmem:[#allocation6 + $0x38] sm:$0xff]  ;;  %v4842_v45 = vld [vmem:[#allocation6 + $0x20] sm:$0xff] }
 0x15b   :  { %v1653_v42 = vadd.f32 %v1652_v57, %v1639_v60  ;;  %2581 = vmatmul.bf16.vlgmr.msra.gmra.mxu2 %v5143_v27  ;;  %v4186_v49 = vor.u32 %v4787_v9, %v4183_v7  ;;  %v4821_v60 = vld [vmem:[#allocation4 + $0x374] sm:$0xf0]  ;;  %v4170_v57 = vor.u32 %v4783_v52, %v4167_v53  ;;  %2985 = vmatpush.bf16.msrb.mxu3 %v4845_v32  ;;  %v4843_v34 = vld [vmem:[#allocation6 + $0x28] sm:$0xff] }
 0x15c   :  { %v4310_v37 = vor.u32 %v4821_v60, %v4309_v56  ;;  %v4861_v9 = vld [vmem:[#allocation6 + $0xb8] sm:$0xff]  ;;  %v4847_v52 = vld [vmem:[#allocation6 + $0x48] sm:$0xff]  ;;  %v5160_v56 = vld [vmem:[%s5176_s4] sm:$0xf] }
 0x15d   :  { %v1667_v2 = vadd.f32 %v1666_v58, %v1653_v42  ;;  %v4779_v58 = vld [vmem:[#allocation4 + $0x22c] sm:$0xf]  ;;  %v4817_v42 = vld [vmem:[#allocation4 + $0x354] sm:$0xf0] }
 0x15e   :  { %2632 = vmatpush.bf16.msrb.mxu2 %v4198_v51  ;;  %v1694_v6 = vpop.f32.mrf.mxu1  ;;  %v4326_v51 = vor.u32 %v4825_v48, %v4325_v47  ;;  %v4859_v53 = vld [vmem:[#allocation6 + $0xa8] sm:$0xff] }
 0x15f   :  { %v1681_v13 = vadd.f32 %v1680_v40, %v1667_v2  ;;  %v4293_v40 = vld [vmem:[#allocation4 + $0x348] sm:$0xf]  ;;  %2986 = vmatpush.bf16.msrb.mxu3 %v4844_v8 }
 0x160   :  { %v4294_v61 = vor.u32 %v4817_v42, %v4293_v40  ;;  %v4277_v2 = vld [vmem:[#allocation4 + $0x328] sm:$0xf]  ;;  %v1841_v40 = vperm.slane %v5160_v56, 0  ;;  %v4857_v42 = vld [vmem:[#allocation6 + $0x98] sm:$0xff] }
 0x161   :  { %v1668_v14 = vpop.f32.mrf.mxu2  ;;  %v1695_v23 = vadd.f32 %v1694_v6, %v1681_v13  ;;  %v4261_v6 = vld [vmem:[#allocation4 + $0x308] sm:$0xf] }
 0x162   :  { %2633 = vmatpush.bf16.msrb.mxu2 %v4182_v59  ;;  %v1654_v11 = vpop.f32.mrf.mxu3  ;;  %v4151_v59 = vld [vmem:[#allocation4 + $0x238] sm:$0xf0] }
 0x163   :  { %v1655_v10 = vadd.f32 %v1654_v11, %v1641_v5  ;;  %v1702_v21 = vmax.f32 %v1695_v23, 0.0  ;;  %v4154_v62 = vor.u32 %v4779_v58, %v4151_v59  ;;  %v4278_v5 = vor.u32 %v4813_v63, %v4277_v2  ;;  %v4809_v11 = vld [vmem:[#allocation4 + $0x314] sm:$0xf0]  ;;  %2987 = vmatpush.bf16.msrb.mxu3 %v4843_v34  ;;  %v4856_v2 = vld [vmem:[#allocation6 + $0x90] sm:$0xff] }
 0x164   :  { %v4262_v13 = vor.u32 %v4809_v11, %v4261_v6 }
 0x165   :  { %v1669_v16 = vadd.f32 %v1668_v14, %v1655_v10  ;;  %v4835_v10 = vld [vmem:[#allocation4 + $0x3ec] sm:$0xf] }
 0x166   :  { %2634 = vmatpush.bf16.msrb.mxu2 %v4166_v1  ;;  %v1696_v24 = vpop.f32.mrf.mxu1  ;;  %v4135_v1 = vld [vmem:[#allocation4 + $0x218] sm:$0xf0] }
 0x167   :  { %v1683_v22 = vadd.f32 %v1682_v19, %v1669_v16  ;;  %v4138_v3 = vor.u32 %v4775_v0, %v4135_v1  ;;  %v4362_v16 = vor.u32 %v4831_v15, %v4359_v35  ;;  %v4346_v19 = vor.u32 %v4827_v17, %v4343_v18  ;;  %2988 = vmatpush.bf16.msrb.mxu3 %v4842_v45  ;;  %v4854_v17 = vld [vmem:[#allocation6 + $0x80] sm:$0xff]  ;;  %v4869_v18 = vld [vmem:[#allocation6 + $0xf8] sm:$0xff] }
 0x169   :  { %v1697_v26 = vadd.f32 %v1696_v24, %v1683_v22  ;;  %v4823_v22 = vld [vmem:[#allocation4 + $0x38c] sm:$0xf]  ;;  %v4311_v24 = vld [vmem:[#allocation4 + $0x378] sm:$0xf0] }
 0x16a   :  { %2635 = vmatpush.bf16.msrb.mxu2 %v4150_v12  ;;  %v4375_v12 = vld [vmem:[#allocation4 + $0x3f8] sm:$0xf0] }
 0x16b   :  { %v1706_v29 = vmax.f32 %v1697_v26, 0.0  ;;  %v4378_v14 = vor.u32 %v4835_v10, %v4375_v12 }
 0x16d   :  { %v5149_v33 = vpack.c.bf16 %v1706_v29, %v1702_v21  ;;  %v4282_v21 = vor.u32 %v4811_v50, %v4279_v28  ;;  %v4807_v29 = vld [vmem:[#allocation4 + $0x30c] sm:$0xf] }
 0x16e   :  { %2636 = vmatpush.bf16.msrb.mxu2 %v4134_v20  ;;  %v4327_v20 = vld [vmem:[#allocation4 + $0x398] sm:$0xf0] }
 0x16f   :  { %2539 = vmatmul.bf16.vlgmr.msrb.gmra.mxu0 %v5149_v33  ;;  %v4330_v23 = vor.u32 %v4823_v22, %v4327_v20 }
 0x170   :  { %2643 = vmatpush.bf16.msrb.mxu0 %v4374_v31 }
 0x171   :  { %2637 = vmatmul.bf16.vlgmr.msrb.gmra.mxu2 %v5143_v27 }
 0x172   :  { %2685 = vmatpush.bf16.msra.mxu2 %v4250_v55  ;;  %v4819_v55 = vld [vmem:[#allocation4 + $0x36c] sm:$0xf] }
 0x173   :  { %v4314_v25 = vor.u32 %v4819_v55, %v4311_v24  ;;  %v4868_v55 = vld [vmem:[#allocation6 + $0xf0] sm:$0xff] }
 0x174   :  { %2644 = vmatpush.bf16.msrb.mxu0 %v4358_v38  ;;  %v4853_v38 = vld [vmem:[#allocation6 + $0x78] sm:$0xff] }
 0x175   :  { %2999 = vmatpush.bf16.msrb.mxu1 %v4853_v38 }
 0x176   :  { %2686 = vmatpush.bf16.msra.mxu2 %v4234_v30  ;;  %v4263_v30 = vld [vmem:[#allocation4 + $0x318] sm:$0xf0] }
 0x177   :  { %v4266_v31 = vor.u32 %v4807_v29, %v4263_v30  ;;  %v4866_v29 = vld [vmem:[#allocation6 + $0xe0] sm:$0xff] }
 0x178   :  { %2645 = vmatpush.bf16.msrb.mxu0 %v4342_v46  ;;  %v4849_v46 = vld [vmem:[#allocation6 + $0x58] sm:$0xff] }
 0x179   :  { %3000 = vmatpush.bf16.msrb.mxu1 %v4852_v41  ;;  %v4865_v41 = vld [vmem:[#allocation6 + $0xd8] sm:$0xff] }
 0x17a   :  { %2687 = vmatpush.bf16.msra.mxu2 %v4218_v36  ;;  %v4841_v36 = vld [vmem:[#allocation6 + $0x18] sm:$0xff]  ;;  %v2498_v47 = vpop.f32.mrf.mxu3 }
 0x17b   :  { %2989 = vmatpush.bf16.msrb.mxu3 %v4841_v36 }
 0x17c   :  { %2646 = vmatpush.bf16.msrb.mxu0 %v4326_v51  ;;  %v4860_v51 = vld [vmem:[#allocation6 + $0xb0] sm:$0xff] }
 0x17d   :  { %3001 = vmatpush.bf16.msrb.mxu1 %v4851_v44 }
 0x17e   :  { %2688 = vmatpush.bf16.msra.mxu2 %v4202_v54  ;;  %v4850_v54 = vld [vmem:[#allocation6 + $0x60] sm:$0xff] }
 0x17f   :  { %2595 = vmatmul.bf16.vlgmr.msra.gmra.mxu0 %v5149_v33  ;;  %2990 = vmatpush.bf16.msrb.mxu3 %v4840_v39 }
 0x180   :  { %2647 = vmatpush.bf16.msrb.mxu0 %v4310_v37  ;;  %v4858_v37 = vld [vmem:[#allocation6 + $0xa0] sm:$0xff] }
 0x181   :  { %3002 = vmatpush.bf16.msrb.mxu1 %v4850_v54 }
 0x182   :  { %2689 = vmatpush.bf16.msra.mxu2 %v4186_v49  ;;  %v4848_v49 = vld [vmem:[#allocation6 + $0x50] sm:$0xff]  ;;  %v2500_v58 = vpop.f32.mrf.mxu3 }
 0x183   :  { %2991 = vmatpush.bf16.msrb.mxu3 %v4839_v43  ;;  %v2501_v0 = vadd.f32 %v2500_v58, %v1841_v40  ;;  %v1843_v43 = vperm.slane %v5160_v56, 2 }
 0x184   :  { %2648 = vmatpush.bf16.msrb.mxu0 %v4294_v61  ;;  %v2499_v61 = vadd.f32 %v2498_v47, %v1841_v40 }
 0x185   :  { %3003 = vmatpush.bf16.msrb.mxu1 %v4849_v46 }
 0x186   :  { %2690 = vmatpush.bf16.msra.mxu2 %v4170_v57  ;;  %v4846_v57 = vld [vmem:[#allocation6 + $0x40] sm:$0xff] }
 0x188   :  { %2649 = vmatpush.bf16.msrb.mxu0 %v4278_v5 }
 0x189   :  { %3004 = vmatpush.bf16.msrb.mxu1 %v4848_v49  ;;  %v4863_v49 = vld [vmem:[#allocation6 + $0xc8] sm:$0xff] }
 0x18a   :  { %2691 = vmatpush.bf16.msra.mxu2 %v4154_v62 }
 0x18c   :  { %2650 = vmatpush.bf16.msrb.mxu0 %v4262_v13  ;;  %v4855_v13 = vld [vmem:[#allocation6 + $0x88] sm:$0xff] }
 0x18d   :  { %3005 = vmatpush.bf16.msrb.mxu1 %v4847_v52 }
 0x18e   :  { %2692 = vmatpush.bf16.msra.mxu2 %v4138_v3 }
 0x18f   :  { %2651 = vmatmul.bf16.vlgmr.msrb.gmra.mxu0 %v5149_v33 }
 0x190   :  { %2699 = vmatpush.bf16.msra.mxu0 %v4378_v14 }
 0x191   :  { %2693 = vmatmul.bf16.vlgmr.msra.gmra.mxu2 %v5143_v27  ;;  %v4815_v27 = vld [vmem:[#allocation4 + $0x34c] sm:$0xf]  ;;  %3006 = vmatpush.bf16.msrb.mxu1 %v4846_v57 }
 0x192   :  { %v4298_v26 = vor.u32 %v4815_v27, %v4295_v4  ;;  %v2512_v7 = vpop.f32.mrf.mxu1  ;;  %3013 = vmatpush.bf16.msrb.mxu2 %v4861_v9  ;;  %v4867_v4 = vld [vmem:[#allocation6 + $0xe8] sm:$0xff] }
 0x193   :  { %v2513_v1 = vadd.f32 %v2512_v7, %v2499_v61 }
 0x194   :  { %2700 = vmatpush.bf16.msra.mxu0 %v4362_v16 }
 0x196   :  { %3014 = vmatpush.bf16.msrb.mxu2 %v4860_v51 }
 0x198   :  { %2701 = vmatpush.bf16.msra.mxu0 %v4346_v19  ;;  %v1842_v19 = vperm.slane %v5160_v56, 1 }
 0x19a   :  { %3015 = vmatpush.bf16.msrb.mxu2 %v4859_v53  ;;  %v2514_v60 = vpop.f32.mrf.mxu1  ;;  %v2554_v63 = vpop.f32.mrf.mxu3 }
 0x19b   :  { %v2515_v5 = vadd.f32 %v2514_v60, %v2501_v0  ;;  %v2555_v27 = vadd.f32 %v2554_v63, %v1842_v19 }
 0x19c   :  { %2702 = vmatpush.bf16.msra.mxu0 %v4330_v23 }
 0x19e   :  { %3016 = vmatpush.bf16.msrb.mxu2 %v4858_v37  ;;  %v4862_v37 = vld [vmem:[#allocation6 + $0xc0] sm:$0xff] }
 0x1a0   :  { %2703 = vmatpush.bf16.msra.mxu0 %v4314_v25 }
 0x1a2   :  { %3017 = vmatpush.bf16.msrb.mxu2 %v4857_v42  ;;  %v2568_v3 = vpop.f32.mrf.mxu1  ;;  %v2556_v20 = vpop.f32.mrf.mxu3 }
 0x1a3   :  { %v2569_v50 = vadd.f32 %v2568_v3, %v2555_v27 }
 0x1a4   :  { %2704 = vmatpush.bf16.msra.mxu0 %v4298_v26  ;;  %v2557_v26 = vadd.f32 %v2556_v20, %v1842_v19 }
 0x1a6   :  { %3018 = vmatpush.bf16.msrb.mxu2 %v4856_v2  ;;  %v1844_v2 = vperm.slane %v5160_v56, 3 }
 0x1a8   :  { %2705 = vmatpush.bf16.msra.mxu0 %v4282_v21 }
 0x1aa   :  { %3019 = vmatpush.bf16.msrb.mxu2 %v4855_v13  ;;  %v2570_v23 = vpop.f32.mrf.mxu1 }
 0x1ab   :  { %v2571_v28 = vadd.f32 %v2570_v23, %v2557_v26 }
 0x1ac   :  { %2706 = vmatpush.bf16.msra.mxu0 %v4266_v31 }
 0x1ae   :  { %3020 = vmatpush.bf16.msrb.mxu2 %v4854_v17 }
 0x1af   :  { %2707 = vmatmul.bf16.vlgmr.msra.gmra.mxu0 %v5149_v33  ;;  %v4838_v33 = vld [vmem:[#allocation6] sm:$0xff] }
 0x1b0   :  { %2992 = vmatpush.bf16.msrb.mxu3 %v4838_v33  ;;  %3027 = vmatpush.bf16.msrb.mxu0 %v4869_v18  ;;  %v4864_v33 = vld [vmem:[#allocation6 + $0xd0] sm:$0xff] }
 0x1b3   :  { %v2624_v8 = vpop.f32.mrf.mxu1 }
 0x1b4   :  { %3028 = vmatpush.bf16.msrb.mxu0 %v4868_v55  ;;  %v4882_v55 = vld [vmem:[%s5178_s6] ss:$0 sm:$0xff] }
 0x1b8   :  { %3029 = vmatpush.bf16.msrb.mxu0 %v4867_v4 }
 0x1ba   :  { %v2610_v30 = vpop.f32.mrf.mxu3 }
 0x1bb   :  { %v2611_v9 = vadd.f32 %v2610_v30, %v1843_v43  ;;  %v2626_v7 = vpop.f32.mrf.mxu1 }
 0x1bc   :  { %3030 = vmatpush.bf16.msrb.mxu0 %v4866_v29 }
 0x1c0   :  { %3031 = vmatpush.bf16.msrb.mxu0 %v4865_v41 }
 0x1c2   :  { %v2612_v54 = vpop.f32.mrf.mxu3 }
 0x1c3   :  { %v2613_v47 = vadd.f32 %v2612_v54, %v1843_v43 }
 0x1c4   :  { %3032 = vmatpush.bf16.msrb.mxu0 %v4864_v33 }
 0x1c5   :  { %v2627_v52 = vadd.f32 %v2626_v7, %v2613_v47 }
 0x1c8   :  { %3033 = vmatpush.bf16.msrb.mxu0 %v4863_v49 }
 0x1cc   :  { %3034 = vmatpush.bf16.msrb.mxu0 %v4862_v37 }
 0x1ce   :  { %v2526_v48 = vpop.f32.mrf.mxu2 }
 0x1cf   :  { %v2527_v6 = vadd.f32 %v2526_v48, %v2513_v1  ;;  %v2625_v48 = vadd.f32 %v2624_v8, %v2611_v9 }
 0x1d5   :  { %v2680_v0 = vpop.f32.mrf.mxu1 }
 0x1d6   :  { %v2528_v59 = vpop.f32.mrf.mxu2 }
 0x1d7   :  { %v2529_v10 = vadd.f32 %v2528_v59, %v2515_v5 }
 0x1da   :  { %v2666_v61 = vpop.f32.mrf.mxu3 }
 0x1db   :  { %v2667_v5 = vadd.f32 %v2666_v61, %v1844_v2 }
 0x1de   :  { %v2582_v11 = vpop.f32.mrf.mxu2 }
 0x1df   :  { %v2583_v21 = vadd.f32 %v2582_v11, %v2569_v50 }
 0x1e2   :  { %v2668_v63 = vpop.f32.mrf.mxu3 }
 0x1e3   :  { %v2669_v11 = vadd.f32 %v2668_v63, %v1844_v2 }
 0x1e6   :  { %v2584_v24 = vpop.f32.mrf.mxu2 }
 0x1e7   :  { %v2585_v31 = vadd.f32 %v2584_v24, %v2571_v28 }
 0x1ec   :  { %v2540_v62 = vpop.f32.mrf.mxu0 }
 0x1ed   :  { %v2541_v12 = vadd.f32 %v2540_v62, %v2527_v6  ;;  %v2682_v6 = vpop.f32.mrf.mxu1 }
 0x1ee   :  { %v2683_v13 = vadd.f32 %v2682_v6, %v2669_v11 }
 0x1ef   :  { %v2713_v35 = vmax.f32 %v2541_v12, 0.0 }
 0x1f4   :  { %v2542_v14 = vpop.f32.mrf.mxu0  ;;  %v2638_v36 = vpop.f32.mrf.mxu2 }
 0x1f5   :  { %v2543_v15 = vadd.f32 %v2542_v14, %v2529_v10  ;;  %v2639_v53 = vadd.f32 %v2638_v36, %v2625_v48  ;;  %v2681_v10 = vadd.f32 %v2680_v0, %v2667_v5 }
 0x1f7   :  { %v2717_v16 = vmax.f32 %v2543_v15, 0.0 }
 0x1f9   :  { %v2721_v22 = vpack.c.bf16 %v2717_v16, %v2713_v35 }
 0x1fb   :  { %2993 = vmatmul.bf16.vlgmr.msrb.gmra.mxu3 %v2721_v22 }
 0x1fc   :  { %v2596_v25 = vpop.f32.mrf.mxu0  ;;  %v2640_v51 = vpop.f32.mrf.mxu2 }
 0x1fd   :  { %v2597_v32 = vadd.f32 %v2596_v25, %v2583_v21  ;;  %v2641_v60 = vadd.f32 %v2640_v51, %v2627_v52 }
 0x1ff   :  { %v2714_v38 = vmax.f32 %v2597_v32, 0.0 }
 0x204   :  { %v2598_v34 = vpop.f32.mrf.mxu0 }
 0x205   :  { %v2599_v45 = vadd.f32 %v2598_v34, %v2585_v31 }
 0x207   :  { %v2718_v39 = vmax.f32 %v2599_v45, 0.0 }
 0x209   :  { %v2722_v44 = vpack.c.bf16 %v2718_v39, %v2714_v38 }
 0x20b   :  { %3007 = vmatmul.bf16.vlgmr.msrb.gmra.mxu1 %v2722_v44 }
 0x20c   :  { %v2652_v46 = vpop.f32.mrf.mxu0 }
 0x20d   :  { %v2653_v57 = vadd.f32 %v2652_v46, %v2639_v53 }
 0x20f   :  { %v2715_v40 = vmax.f32 %v2653_v57, 0.0 }
 0x214   :  { %v2654_v58 = vpop.f32.mrf.mxu0  ;;  %v2694_v1 = vpop.f32.mrf.mxu2 }
 0x215   :  { %v2655_v59 = vadd.f32 %v2654_v58, %v2641_v60  ;;  %v2695_v14 = vadd.f32 %v2694_v1, %v2681_v10 }
 0x217   :  { %v2719_v42 = vmax.f32 %v2655_v59, 0.0 }
 0x219   :  { %v2723_v62 = vpack.c.bf16 %v2719_v42, %v2715_v40 }
 0x21b   :  { %3021 = vmatmul.bf16.vlgmr.msrb.gmra.mxu2 %v2723_v62 }
 0x21c   :  { %v2696_v12 = vpop.f32.mrf.mxu2 }
 0x21d   :  { %v2697_v15 = vadd.f32 %v2696_v12, %v2683_v13 }
 0x22c   :  { %v2708_v3 = vpop.f32.mrf.mxu0 }
 0x22d   :  { %v2709_v35 = vadd.f32 %v2708_v3, %v2695_v14 }
 0x22f   :  { %v2716_v18 = vmax.f32 %v2709_v35, 0.0 }
 0x234   :  { %v2710_v16 = vpop.f32.mrf.mxu0 }
 0x235   :  { %v2711_v17 = vadd.f32 %v2710_v16, %v2697_v15 }
 0x237   :  { %v2720_v19 = vmax.f32 %v2711_v17, 0.0 }
 0x239   :  { %v2724_v22 = vpack.c.bf16 %v2720_v19, %v2716_v18 }
 0x23b   :  { %3035 = vmatmul.bf16.vlgmr.msrb.gmra.mxu0 %v2724_v22 }
 0x27e   :  { %v2994_v20 = vpop.f32.mrf.mxu3 }
 0x27f   :  { %v2995_v4 = vadd.f32 %v4882_v55, %v2994_v20 }
 0x286   :  { %v2996_v24 = vpop.f32.mrf.mxu3 }
 0x287   :  { %v2997_v26 = vadd.f32 %v4882_v55, %v2996_v24 }
 0x288   :  { %v3008_v23 = vpop.f32.mrf.mxu1 }
 0x289   :  { %v3009_v28 = vadd.f32 %v3008_v23, %v2995_v4 }
 0x290   :  { %v3010_v27 = vpop.f32.mrf.mxu1 }
 0x291   :  { %v3011_v21 = vadd.f32 %v3010_v27, %v2997_v26 }
 0x29e   :  { %v3022_v56 = vpop.f32.mrf.mxu2 }
 0x29f   :  { %v3023_v29 = vadd.f32 %v3022_v56, %v3009_v28 }
 0x2a6   :  { %v3024_v50 = vpop.f32.mrf.mxu2 }
 0x2a7   :  { %v3025_v30 = vadd.f32 %v3024_v50, %v3011_v21 }
 0x2b8   :  { %v3036_v25 = vpop.f32.mrf.mxu0 }
 0x2b9   :  { %v3037_v32 = vadd.f32 %v3036_v25, %v3023_v29 }
 0x2c0   :  { %v3038_v31 = vpop.f32.mrf.mxu0 }
 0x2c1   :  { %v3039_v8 = vadd.f32 %v3038_v31, %v3025_v30 }
 0x2c3   :  { %v4873_v34 = vpack.c.bf16 %v3039_v8, %v3037_v32 }
 0x2c5   :  { %4874 = vst [vmem:[%s5179_s7] sm:$0xff] %v4873_v34  }
 0x2c6   :  { %3049 = vsyncpa [#allocation3], 1 }
 0x2c7   :  { %3050 = vsyncpa [#allocation5], 1 }

</bundles_post_ra>
